<compile_context>
chip_gen: v6e
topology: v6e:2x2x1
jax: 0.10.0
libtpu: 0.0.40
codegen_flags: <defaults>
</compile_context>

<pallas_src>
import numpy as np
import jax
import jax.numpy as jnp
from jax.experimental import pallas as pl
from jax.experimental.pallas import tpu as pltpu

VMEM_SPEC = pl.BlockSpec(memory_space=pltpu.MemorySpace.VMEM)
SMEM_SPEC = pl.BlockSpec(memory_space=pltpu.MemorySpace.SMEM)

HEADS = 4
BN_EPS = 1e-5
DROP_P = 0.5

# Packed parameter-slab row layout (all rows lane-padded to 128 f32):
#  0 gamma1   1 beta1   2 gamma2   3 beta2   4 gamma3   5 beta3
#  6 wa1(1x128)  7 ba1  8 ba2  9 wa3(64x1 as row)  10 ba3(scalar)
# 11 bc1  12 bc2  13 wc3(32x1 as row)  14 bc3(scalar)  15 action mask (appended in jit)


# ---------------------------------------------------------------------------
# In-kernel helpers (traced inside the fused kernel body)
# ---------------------------------------------------------------------------
def _dropout(x, seed, salt):
    """Inverted dropout (training=True) via an in-kernel integer hash.

    No pltpu PRNG (it has no interpret-mode lowering); plain int32 ops only.
    Fused select: keep -> x / (1-p), drop -> 0, no intermediate float mask.
    """
    n, f = x.shape
    r = jax.lax.broadcasted_iota(jnp.int32, (n, f), 0)
    c = jax.lax.broadcasted_iota(jnp.int32, (n, f), 1)
    h = seed + jnp.int32(salt) + r * jnp.int32(0x0019660D) + c * jnp.int32(0x3C6EF35F)
    h = (h ^ (h >> 13)) * jnp.int32(0x27220A95)
    h = (h ^ (h >> 17)) * jnp.int32(0x01000193)
    h = h ^ (h >> 5)
    u = h & jnp.int32(0x7FFFFFFF)                      # uniform in [0, 2^31)
    thresh = jnp.int32(int((1.0 - DROP_P) * 2147483648.0))
    return jnp.where(u < thresh, x * (1.0 / (1.0 - DROP_P)), 0.0)


def _gat_bn_layer(h, adj_neg, wcat, gamma, beta, f_out, apply_elu, seed, salt):
    """GATConv(heads=4, concat=False) + BatchNorm1d(train) + [ELU] + dropout.

    wcat = [w | w @ s]: one MXU op yields projected features (cols [:heads*f_out])
    and all per-head src/dst attention scores (last 2*heads cols).
    GAT bias and the 1/HEADS mean-scale are folded into BN (eps scaled by HEADS^2).
    """
    base = HEADS * f_out
    fa = jnp.dot(h, wcat, preferred_element_type=jnp.float32)   # [N, heads*f_out + 2*heads]

    out = None
    for hd in range(HEADS):                                     # heads=4, unrolled
        a_src = fa[:, base + hd:base + hd + 1]                  # [N,1] per-source score
        a_dst = fa[:, base + HEADS + hd:base + HEADS + hd + 1]  # [N,1] per-dest score
        e = a_dst + jnp.transpose(a_src)                        # e[dst, src]
        e = jnp.where(e > 0, e, 0.2 * e)                        # LeakyReLU(0.2)
        e = e + adj_neg                                         # mask non-edges
        e = e - jnp.max(e, axis=1, keepdims=True)
        p = jnp.exp(e)                                          # masked entries -> exact 0
        attn = p * pl.reciprocal(jnp.sum(p, axis=1, keepdims=True), approx=True)
        part = jnp.dot(attn, fa[:, hd * f_out:(hd + 1) * f_out],
                       preferred_element_type=jnp.float32)
        out = part if out is None else out + part               # running accumulation

    # BatchNorm1d, training mode; 1/HEADS scale folded via eps * HEADS^2 (exact).
    mean = jnp.mean(out, axis=0, keepdims=True)
    var = jnp.mean((out - mean) ** 2, axis=0, keepdims=True)
    out = (out - mean) * jax.lax.rsqrt(var + BN_EPS * float(HEADS * HEADS))
    out = out * gamma + beta

    if apply_elu:
        out = jnp.where(out > 0, out, jnp.exp(out) - 1.0)       # ELU(alpha=1)

    return _dropout(out, seed, salt)


# ---------------------------------------------------------------------------
# Fully fused forward kernel
# ---------------------------------------------------------------------------
def fused_ac_kernel(seed_ref, x_ref, adj_ref,
                    wcat1_ref, wcat2_ref, wcat3_ref,
                    wa2_ref, wc1_ref, wc2_ref, vecs_ref,
                    out_ref):
    n = x_ref.shape[0]
    seed = seed_ref[0]

    x = x_ref[...]                                       # [N, 5]
    adj_neg = jnp.where(adj_ref[...] > 0, 0.0, -1e30)    # additive edge mask, reused

    h1 = _gat_bn_layer(x, adj_neg, wcat1_ref[...],
                       vecs_ref[0:1, :], vecs_ref[1:2, :], 128, True, seed, 1)
    h2 = _gat_bn_layer(h1, adj_neg, wcat2_ref[...],
                       vecs_ref[2:3, 0:64], vecs_ref[3:4, 0:64], 64, True, seed, 2)
    h3 = _gat_bn_layer(h2, adj_neg, wcat3_ref[...],
                       vecs_ref[4:5, 0:32], vecs_ref[5:6, 0:32], 32, False, seed, 3)

    pooled = jnp.mean(h3, axis=0, keepdims=True)         # [1, 32]  global_mean_pool

    # critic: Linear(32,128) -> Linear(128,32) -> Linear(32,1)
    c = jnp.dot(pooled, wc1_ref[...], preferred_element_type=jnp.float32) + vecs_ref[11:12, :]
    c = jnp.dot(c, wc2_ref[...], preferred_element_type=jnp.float32) + vecs_ref[12:13, 0:32]
    value = jnp.sum(c * vecs_ref[13:14, 0:32], axis=1, keepdims=True) + vecs_ref[14:15, 0:1]

    # actor on every node; action rows are gathered outside the kernel.
    ain = jnp.sum(h3 * pooled, axis=1, keepdims=True)                     # [N,1]
    a = ain * vecs_ref[6:7, :] + vecs_ref[7:8, :]                         # Linear(1,128)
    a = jnp.dot(a, wa2_ref[...], preferred_element_type=jnp.float32) + vecs_ref[8:9, 0:64]
    a = jnp.sum(a * vecs_ref[9:10, 0:64], axis=1, keepdims=True) + vecs_ref[10:11, 0:1]
    logits = jnp.transpose(jnp.tanh(a))                                   # [1, N]

    amask = vecs_ref[15:16, 0:n]                          # 1.0 where fea[:,3]==1
    masked = jnp.where(amask > 0, logits, -1e30)
    m = jnp.max(masked, axis=1, keepdims=True)
    e = jnp.exp(masked - m)                               # non-action entries underflow to 0
    ssum = jnp.sum(e, axis=1, keepdims=True)
    prob = e / ssum                                       # exact softmax over action nodes
    logp = masked - m - jnp.log(ssum)                     # exact log_softmax

    # single lane-dense packed output: row0 = prob, row1 = log_prob, row2 = value
    zpad = jnp.zeros((1, 128 - n), jnp.float32)
    out_ref[0:1, :] = jnp.concatenate([prob, zpad], axis=1)
    out_ref[1:2, :] = jnp.concatenate([logp, zpad], axis=1)
    out_ref[2:3, :] = jnp.concatenate([value, jnp.zeros((1, 127), jnp.float32)], axis=1)


def ac_fused_call(seed, in_x, adj, wcat1, wcat2, wcat3, wa2, wc1, wc2, vecs):
    return pl.pallas_call(
        fused_ac_kernel,
        out_shape=jax.ShapeDtypeStruct((3, 128), jnp.float32),
        in_specs=[SMEM_SPEC] + [VMEM_SPEC] * 9,
        out_specs=VMEM_SPEC,
    )(seed, in_x, adj, wcat1, wcat2, wcat3, wa2, wc1, wc2, vecs)


# ---------------------------------------------------------------------------
# Full AC.forward (jitted; action indices precomputed on host from the raw input)
# ---------------------------------------------------------------------------
@jax.jit
def ac_forward(x_full, adj, idx, seed, mats, param_slab):
    in_x = x_full[:, :-1]                                           # data.x[:, :-1]
    n = x_full.shape[0]
    amask = (x_full[:, 3] == 1.0).astype(jnp.float32)
    amask_pad = jnp.zeros((1, 128), jnp.float32).at[0, :n].set(amask)
    vecs = jnp.concatenate([param_slab, amask_pad], axis=0)         # [16, 128] packed slab

    out = ac_fused_call(seed, in_x, adj,
                        mats["wcat1"], mats["wcat2"], mats["wcat3"],
                        mats["wa2"], mats["wc1"], mats["wc2"], vecs)

    prob = jnp.take(out[0:1, :], idx, axis=1)                       # [1, A]
    log_prob = jnp.take(out[1:2, :], idx, axis=1)                   # [1, A]
    value = out[2:3, 0:1]                                           # [1, 1]
    return prob, value, log_prob


# ---------------------------------------------------------------------------
# Parameter init (deterministic, synthetic)
# ---------------------------------------------------------------------------
def init_gat_layer(key, f_in, f_out, heads=HEADS):
    k1, k2, k3 = jax.random.split(key, 3)
    w = np.asarray(jax.random.normal(k1, (f_in, heads * f_out), jnp.float32)) * 0.1
    a_src = np.asarray(jax.random.normal(k2, (heads, f_out), jnp.float32)) * 0.1
    a_dst = np.asarray(jax.random.normal(k3, (heads, f_out), jnp.float32)) * 0.1
    s = np.zeros((heads * f_out, 2 * heads), np.float32)
    for h in range(heads):
        s[h * f_out:(h + 1) * f_out, h] = a_src[h]
        s[h * f_out:(h + 1) * f_out, heads + h] = a_dst[h]
    ws = w @ s                                            # fold score matmul into projection
    wcat = np.concatenate([w, ws], axis=1).astype(np.float32)   # [f_in, heads*f_out + 2*heads]
    gamma = np.ones((f_out,), np.float32)                 # BatchNorm weight
    beta = np.zeros((f_out,), np.float32)                 # BatchNorm bias
    # GATConv bias omitted: it cancels exactly through train-mode BatchNorm mean-sub.
    return jnp.asarray(wcat), gamma, beta


def init_linear(key, f_in, f_out):
    k1, k2 = jax.random.split(key)
    w = np.asarray(jax.random.normal(k1, (f_in, f_out), jnp.float32)) * 0.1
    b = np.asarray(jax.random.normal(k2, (f_out,), jnp.float32)) * 0.01
    return w, b


def build_param_slab(rows):
    slab = np.zeros((15, 128), np.float32)
    for r, v in rows.items():
        v = np.asarray(v, np.float32).reshape(-1)
        slab[r, :v.shape[0]] = v
    return jnp.asarray(slab)


if __name__ == "__main__":
    key = jax.random.PRNGKey(0)
    (k_feat, k_p1, k_p2, k_p3, ka1, ka2, ka3, kc1, kc2, kc3, _) = jax.random.split(key, 11)

    # --- synthetic graph: 8 nodes, 6 raw features (last col dropped in forward)
    N = 8
    x_np = np.array(jax.random.normal(k_feat, (N, 6), jnp.float32))
    x_np[:, 3] = 0.0
    x_np[[0, 2, 5], 3] = 1.0               # condition fea[:,3]==1 -> 3 action nodes
    idx_np = np.nonzero(x_np[:, 3] == 1.0)[0].astype(np.int32)   # host-side, before device work
    x_full = jnp.asarray(x_np)
    idx = jnp.asarray(idx_np)

    # ring graph, both directions, plus self-loops (PyG GATConv default)
    src = np.concatenate([np.arange(N), (np.arange(N) + 1) % N])
    dst = np.concatenate([(np.arange(N) + 1) % N, np.arange(N)])
    adj_np = np.zeros((N, N), np.float32)
    adj_np[dst, src] = 1.0
    adj_np[np.arange(N), np.arange(N)] = 1.0
    adj = jnp.asarray(adj_np)

    # --- parameters
    wcat1, g1, b1 = init_gat_layer(k_p1, 5, 128)
    wcat2, g2, b2 = init_gat_layer(k_p2, 128, 64)
    wcat3, g3, b3 = init_gat_layer(k_p3, 64, 32)
    wa1, ba1 = init_linear(ka1, 1, 128)
    wa2, ba2 = init_linear(ka2, 128, 64)
    wa3, ba3 = init_linear(ka3, 64, 1)
    wc1, bc1 = init_linear(kc1, 32, 128)
    wc2, bc2 = init_linear(kc2, 128, 32)
    wc3, bc3 = init_linear(kc3, 32, 1)

    param_slab = build_param_slab({
        0: g1, 1: b1, 2: g2, 3: b2, 4: g3, 5: b3,
        6: wa1, 7: ba1, 8: ba2, 9: wa3, 10: ba3,
        11: bc1, 12: bc2, 13: wc3, 14: bc3,
    })

    mats = {
        "wcat1": wcat1, "wcat2": wcat2, "wcat3": wcat3,
        "wa2": jnp.asarray(wa2), "wc1": jnp.asarray(wc1), "wc2": jnp.asarray(wc2),
    }

    seed = jnp.array([12345], dtype=jnp.int32)   # dropout seed (SMEM scalar)

    prob, value, log_prob = ac_forward(x_full, adj, idx, seed, mats, param_slab)
    jax.block_until_ready((prob, value, log_prob))

    assert prob.shape == (1, 3) and value.shape == (1, 1) and log_prob.shape == (1, 3)
    assert np.isfinite(np.asarray(prob)).all()
    assert np.isfinite(np.asarray(value)).all()
    assert abs(float(jnp.sum(prob)) - 1.0) < 1e-4
    assert np.allclose(np.asarray(jnp.exp(log_prob)), np.asarray(prob), atol=1e-5)
    print("KERNEL_OK")
</pallas_src>

<mosaic_0001>
module attributes {stable_mosaic.version = 11 : i64} {
  func.func @fused_ac_kernel(%arg0: memref<1xi32, #tpu.memory_space<smem>>, %arg1: memref<8x5xf32, #tpu.memory_space<vmem>>, %arg2: memref<8x8xf32, #tpu.memory_space<vmem>>, %arg3: memref<5x520xf32, #tpu.memory_space<vmem>>, %arg4: memref<128x264xf32, #tpu.memory_space<vmem>>, %arg5: memref<64x136xf32, #tpu.memory_space<vmem>>, %arg6: memref<128x64xf32, #tpu.memory_space<vmem>>, %arg7: memref<32x128xf32, #tpu.memory_space<vmem>>, %arg8: memref<128x32xf32, #tpu.memory_space<vmem>>, %arg9: memref<16x128xf32, #tpu.memory_space<vmem>>, %arg10: memref<3x128xf32, #tpu.memory_space<vmem>>) attributes {dimension_semantics = [], scalar_prefetch = 0 : i64, scratch_operands = 0 : i64, tpu.core_type = #tpu.core_type<tc>} {
    %c0 = arith.constant 0 : index
    %0 = memref.load %arg0[%c0] : memref<1xi32, #tpu.memory_space<smem>>
    %c0_0 = arith.constant 0 : index
    %c0_1 = arith.constant 0 : index
    %1 = vector.load %arg1[%c0_0, %c0_1] : memref<8x5xf32, #tpu.memory_space<vmem>>, vector<8x5xf32>
    %c0_2 = arith.constant 0 : index
    %c0_3 = arith.constant 0 : index
    %2 = vector.load %arg2[%c0_2, %c0_3] : memref<8x8xf32, #tpu.memory_space<vmem>>, vector<8x8xf32>
    %cst = arith.constant 0.000000e+00 : f32
    %3 = vector.broadcast %cst : f32 to vector<8x8xf32>
    %4 = arith.cmpf ogt, %2, %3 : vector<8x8xf32>
    %cst_4 = arith.constant 0.000000e+00 : f32
    %cst_5 = arith.constant -1.000000e+30 : f32
    %5 = vector.broadcast %cst_4 : f32 to vector<8x8xf32>
    %6 = vector.broadcast %cst_5 : f32 to vector<8x8xf32>
    %7 = arith.select %4, %5, %6 : vector<8x8xi1>, vector<8x8xf32>
    %c0_6 = arith.constant 0 : index
    %c0_7 = arith.constant 0 : index
    %8 = vector.load %arg3[%c0_6, %c0_7] : memref<5x520xf32, #tpu.memory_space<vmem>>, vector<5x520xf32>
    %c0_8 = arith.constant 0 : index
    %c0_9 = arith.constant 0 : index
    %9 = vector.load %arg9[%c0_8, %c0_9] : memref<16x128xf32, #tpu.memory_space<vmem>>, vector<1x128xf32>
    %c1 = arith.constant 1 : index
    %c0_10 = arith.constant 0 : index
    %10 = vector.load %arg9[%c1, %c0_10] : memref<16x128xf32, #tpu.memory_space<vmem>>, vector<1x128xf32>
    %cst_11 = arith.constant dense<0.000000e+00> : vector<8x520xf32>
    %11 = tpu.matmul %1, %8, %cst_11 {dimension_numbers = #tpu.dot_dimension_numbers<[1], [0], [0], [1], [0, 0, 1, 1], [], []>} : vector<8x5xf32>, vector<5x520xf32>, vector<8x520xf32> -> vector<8x520xf32>
    %12 = vector.extract_strided_slice %11 {offsets = [0, 512], sizes = [8, 1], strides = [1, 1]} : vector<8x520xf32> to vector<8x1xf32>
    %13 = vector.extract_strided_slice %11 {offsets = [0, 516], sizes = [8, 1], strides = [1, 1]} : vector<8x520xf32> to vector<8x1xf32>
    %14 = tpu.transpose %12, [1, 0] : vector<8x1xf32> -> vector<1x8xf32>
    %15 = vector.broadcast %13 : vector<8x1xf32> to vector<8x8xf32>
    %16 = vector.broadcast %14 : vector<1x8xf32> to vector<8x8xf32>
    %17 = arith.addf %15, %16 : vector<8x8xf32>
    %cst_12 = arith.constant 0.000000e+00 : f32
    %18 = vector.broadcast %cst_12 : f32 to vector<8x8xf32>
    %19 = arith.cmpf ogt, %17, %18 : vector<8x8xf32>
    %cst_13 = arith.constant 2.000000e-01 : f32
    %20 = vector.broadcast %cst_13 : f32 to vector<8x8xf32>
    %21 = arith.mulf %20, %17 : vector<8x8xf32>
    %22 = arith.select %19, %17, %21 : vector<8x8xi1>, vector<8x8xf32>
    %23 = arith.addf %22, %7 : vector<8x8xf32>
    %cst_14 = arith.constant dense<0xFF800000> : vector<8xf32>
    %24 = vector.multi_reduction <maximumf>, %23, %cst_14 [1] : vector<8x8xf32> to vector<8xf32>
    %25 = vector.shape_cast %24 : vector<8xf32> to vector<8x1xf32>
    %26 = vector.broadcast %25 : vector<8x1xf32> to vector<8x8xf32>
    %27 = arith.subf %23, %26 : vector<8x8xf32>
    %28 = math.exp %27 : vector<8x8xf32>
    %cst_15 = arith.constant dense<0.000000e+00> : vector<8xf32>
    %29 = vector.multi_reduction <add>, %28, %cst_15 [1] : vector<8x8xf32> to vector<8xf32>
    %30 = vector.shape_cast %29 : vector<8xf32> to vector<8x1xf32>
    %31 = tpu.reciprocal %30 {approx = true} : vector<8x1xf32> -> vector<8x1xf32>
    %32 = vector.broadcast %31 : vector<8x1xf32> to vector<8x8xf32>
    %33 = arith.mulf %28, %32 : vector<8x8xf32>
    %34 = vector.extract_strided_slice %11 {offsets = [0, 0], sizes = [8, 128], strides = [1, 1]} : vector<8x520xf32> to vector<8x128xf32>
    %cst_16 = arith.constant dense<0.000000e+00> : vector<8x128xf32>
    %35 = tpu.matmul %33, %34, %cst_16 {dimension_numbers = #tpu.dot_dimension_numbers<[1], [0], [0], [1], [0, 0, 1, 1], [], []>} : vector<8x8xf32>, vector<8x128xf32>, vector<8x128xf32> -> vector<8x128xf32>
    %36 = vector.extract_strided_slice %11 {offsets = [0, 513], sizes = [8, 1], strides = [1, 1]} : vector<8x520xf32> to vector<8x1xf32>
    %37 = vector.extract_strided_slice %11 {offsets = [0, 517], sizes = [8, 1], strides = [1, 1]} : vector<8x520xf32> to vector<8x1xf32>
    %38 = tpu.transpose %36, [1, 0] : vector<8x1xf32> -> vector<1x8xf32>
    %39 = vector.broadcast %37 : vector<8x1xf32> to vector<8x8xf32>
    %40 = vector.broadcast %38 : vector<1x8xf32> to vector<8x8xf32>
    %41 = arith.addf %39, %40 : vector<8x8xf32>
    %cst_17 = arith.constant 0.000000e+00 : f32
    %42 = vector.broadcast %cst_17 : f32 to vector<8x8xf32>
    %43 = arith.cmpf ogt, %41, %42 : vector<8x8xf32>
    %cst_18 = arith.constant 2.000000e-01 : f32
    %44 = vector.broadcast %cst_18 : f32 to vector<8x8xf32>
    %45 = arith.mulf %44, %41 : vector<8x8xf32>
    %46 = arith.select %43, %41, %45 : vector<8x8xi1>, vector<8x8xf32>
    %47 = arith.addf %46, %7 : vector<8x8xf32>
    %cst_19 = arith.constant dense<0xFF800000> : vector<8xf32>
    %48 = vector.multi_reduction <maximumf>, %47, %cst_19 [1] : vector<8x8xf32> to vector<8xf32>
    %49 = vector.shape_cast %48 : vector<8xf32> to vector<8x1xf32>
    %50 = vector.broadcast %49 : vector<8x1xf32> to vector<8x8xf32>
    %51 = arith.subf %47, %50 : vector<8x8xf32>
    %52 = math.exp %51 : vector<8x8xf32>
    %cst_20 = arith.constant dense<0.000000e+00> : vector<8xf32>
    %53 = vector.multi_reduction <add>, %52, %cst_20 [1] : vector<8x8xf32> to vector<8xf32>
    %54 = vector.shape_cast %53 : vector<8xf32> to vector<8x1xf32>
    %55 = tpu.reciprocal %54 {approx = true} : vector<8x1xf32> -> vector<8x1xf32>
    %56 = vector.broadcast %55 : vector<8x1xf32> to vector<8x8xf32>
    %57 = arith.mulf %52, %56 : vector<8x8xf32>
    %58 = vector.extract_strided_slice %11 {offsets = [0, 128], sizes = [8, 128], strides = [1, 1]} : vector<8x520xf32> to vector<8x128xf32>
    %cst_21 = arith.constant dense<0.000000e+00> : vector<8x128xf32>
    %59 = tpu.matmul %57, %58, %cst_21 {dimension_numbers = #tpu.dot_dimension_numbers<[1], [0], [0], [1], [0, 0, 1, 1], [], []>} : vector<8x8xf32>, vector<8x128xf32>, vector<8x128xf32> -> vector<8x128xf32>
    %60 = arith.addf %35, %59 : vector<8x128xf32>
    %61 = vector.extract_strided_slice %11 {offsets = [0, 514], sizes = [8, 1], strides = [1, 1]} : vector<8x520xf32> to vector<8x1xf32>
    %62 = vector.extract_strided_slice %11 {offsets = [0, 518], sizes = [8, 1], strides = [1, 1]} : vector<8x520xf32> to vector<8x1xf32>
    %63 = tpu.transpose %61, [1, 0] : vector<8x1xf32> -> vector<1x8xf32>
    %64 = vector.broadcast %62 : vector<8x1xf32> to vector<8x8xf32>
    %65 = vector.broadcast %63 : vector<1x8xf32> to vector<8x8xf32>
    %66 = arith.addf %64, %65 : vector<8x8xf32>
    %cst_22 = arith.constant 0.000000e+00 : f32
    %67 = vector.broadcast %cst_22 : f32 to vector<8x8xf32>
    %68 = arith.cmpf ogt, %66, %67 : vector<8x8xf32>
    %cst_23 = arith.constant 2.000000e-01 : f32
    %69 = vector.broadcast %cst_23 : f32 to vector<8x8xf32>
    %70 = arith.mulf %69, %66 : vector<8x8xf32>
    %71 = arith.select %68, %66, %70 : vector<8x8xi1>, vector<8x8xf32>
    %72 = arith.addf %71, %7 : vector<8x8xf32>
    %cst_24 = arith.constant dense<0xFF800000> : vector<8xf32>
    %73 = vector.multi_reduction <maximumf>, %72, %cst_24 [1] : vector<8x8xf32> to vector<8xf32>
    %74 = vector.shape_cast %73 : vector<8xf32> to vector<8x1xf32>
    %75 = vector.broadcast %74 : vector<8x1xf32> to vector<8x8xf32>
    %76 = arith.subf %72, %75 : vector<8x8xf32>
    %77 = math.exp %76 : vector<8x8xf32>
    %cst_25 = arith.constant dense<0.000000e+00> : vector<8xf32>
    %78 = vector.multi_reduction <add>, %77, %cst_25 [1] : vector<8x8xf32> to vector<8xf32>
    %79 = vector.shape_cast %78 : vector<8xf32> to vector<8x1xf32>
    %80 = tpu.reciprocal %79 {approx = true} : vector<8x1xf32> -> vector<8x1xf32>
    %81 = vector.broadcast %80 : vector<8x1xf32> to vector<8x8xf32>
    %82 = arith.mulf %77, %81 : vector<8x8xf32>
    %83 = vector.extract_strided_slice %11 {offsets = [0, 256], sizes = [8, 128], strides = [1, 1]} : vector<8x520xf32> to vector<8x128xf32>
    %cst_26 = arith.constant dense<0.000000e+00> : vector<8x128xf32>
    %84 = tpu.matmul %82, %83, %cst_26 {dimension_numbers = #tpu.dot_dimension_numbers<[1], [0], [0], [1], [0, 0, 1, 1], [], []>} : vector<8x8xf32>, vector<8x128xf32>, vector<8x128xf32> -> vector<8x128xf32>
    %85 = arith.addf %60, %84 : vector<8x128xf32>
    %86 = vector.extract_strided_slice %11 {offsets = [0, 515], sizes = [8, 1], strides = [1, 1]} : vector<8x520xf32> to vector<8x1xf32>
    %87 = vector.extract_strided_slice %11 {offsets = [0, 519], sizes = [8, 1], strides = [1, 1]} : vector<8x520xf32> to vector<8x1xf32>
    %88 = tpu.transpose %86, [1, 0] : vector<8x1xf32> -> vector<1x8xf32>
    %89 = vector.broadcast %87 : vector<8x1xf32> to vector<8x8xf32>
    %90 = vector.broadcast %88 : vector<1x8xf32> to vector<8x8xf32>
    %91 = arith.addf %89, %90 : vector<8x8xf32>
    %cst_27 = arith.constant 0.000000e+00 : f32
    %92 = vector.broadcast %cst_27 : f32 to vector<8x8xf32>
    %93 = arith.cmpf ogt, %91, %92 : vector<8x8xf32>
    %cst_28 = arith.constant 2.000000e-01 : f32
    %94 = vector.broadcast %cst_28 : f32 to vector<8x8xf32>
    %95 = arith.mulf %94, %91 : vector<8x8xf32>
    %96 = arith.select %93, %91, %95 : vector<8x8xi1>, vector<8x8xf32>
    %97 = arith.addf %96, %7 : vector<8x8xf32>
    %cst_29 = arith.constant dense<0xFF800000> : vector<8xf32>
    %98 = vector.multi_reduction <maximumf>, %97, %cst_29 [1] : vector<8x8xf32> to vector<8xf32>
    %99 = vector.shape_cast %98 : vector<8xf32> to vector<8x1xf32>
    %100 = vector.broadcast %99 : vector<8x1xf32> to vector<8x8xf32>
    %101 = arith.subf %97, %100 : vector<8x8xf32>
    %102 = math.exp %101 : vector<8x8xf32>
    %cst_30 = arith.constant dense<0.000000e+00> : vector<8xf32>
    %103 = vector.multi_reduction <add>, %102, %cst_30 [1] : vector<8x8xf32> to vector<8xf32>
    %104 = vector.shape_cast %103 : vector<8xf32> to vector<8x1xf32>
    %105 = tpu.reciprocal %104 {approx = true} : vector<8x1xf32> -> vector<8x1xf32>
    %106 = vector.broadcast %105 : vector<8x1xf32> to vector<8x8xf32>
    %107 = arith.mulf %102, %106 : vector<8x8xf32>
    %108 = vector.extract_strided_slice %11 {offsets = [0, 384], sizes = [8, 128], strides = [1, 1]} : vector<8x520xf32> to vector<8x128xf32>
    %cst_31 = arith.constant dense<0.000000e+00> : vector<8x128xf32>
    %109 = tpu.matmul %107, %108, %cst_31 {dimension_numbers = #tpu.dot_dimension_numbers<[1], [0], [0], [1], [0, 0, 1, 1], [], []>} : vector<8x8xf32>, vector<8x128xf32>, vector<8x128xf32> -> vector<8x128xf32>
    %110 = arith.addf %85, %109 : vector<8x128xf32>
    %cst_32 = arith.constant dense<0.000000e+00> : vector<128xf32>
    %111 = vector.multi_reduction <add>, %110, %cst_32 [0] : vector<8x128xf32> to vector<128xf32>
    %112 = vector.shape_cast %111 : vector<128xf32> to vector<1x128xf32>
    %cst_33 = arith.constant 8.000000e+00 : f32
    %113 = vector.broadcast %cst_33 : f32 to vector<1x128xf32>
    %114 = arith.divf %112, %113 : vector<1x128xf32>
    %115 = vector.broadcast %114 : vector<1x128xf32> to vector<8x128xf32>
    %116 = arith.subf %110, %115 : vector<8x128xf32>
    %117 = arith.mulf %116, %116 : vector<8x128xf32>
    %cst_34 = arith.constant dense<0.000000e+00> : vector<128xf32>
    %118 = vector.multi_reduction <add>, %117, %cst_34 [0] : vector<8x128xf32> to vector<128xf32>
    %119 = vector.shape_cast %118 : vector<128xf32> to vector<1x128xf32>
    %cst_35 = arith.constant 8.000000e+00 : f32
    %120 = vector.broadcast %cst_35 : f32 to vector<1x128xf32>
    %121 = arith.divf %119, %120 : vector<1x128xf32>
    %122 = vector.broadcast %114 : vector<1x128xf32> to vector<8x128xf32>
    %123 = arith.subf %110, %122 : vector<8x128xf32>
    %cst_36 = arith.constant 1.600000e-04 : f32
    %124 = vector.broadcast %cst_36 : f32 to vector<1x128xf32>
    %125 = arith.addf %121, %124 : vector<1x128xf32>
    %126 = math.rsqrt %125 : vector<1x128xf32>
    %127 = vector.broadcast %126 : vector<1x128xf32> to vector<8x128xf32>
    %128 = arith.mulf %123, %127 : vector<8x128xf32>
    %129 = vector.broadcast %9 : vector<1x128xf32> to vector<8x128xf32>
    %130 = arith.mulf %128, %129 : vector<8x128xf32>
    %131 = vector.broadcast %10 : vector<1x128xf32> to vector<8x128xf32>
    %132 = arith.addf %130, %131 : vector<8x128xf32>
    %cst_37 = arith.constant 0.000000e+00 : f32
    %133 = vector.broadcast %cst_37 : f32 to vector<8x128xf32>
    %134 = arith.cmpf ogt, %132, %133 : vector<8x128xf32>
    %135 = math.exp %132 : vector<8x128xf32>
    %cst_38 = arith.constant 1.000000e+00 : f32
    %136 = vector.broadcast %cst_38 : f32 to vector<8x128xf32>
    %137 = arith.subf %135, %136 : vector<8x128xf32>
    %138 = arith.select %134, %132, %137 : vector<8x128xi1>, vector<8x128xf32>
    %139 = tpu.iota {dimensions = array<i32: 0>} : vector<8x128xi32>
    %140 = tpu.iota {dimensions = array<i32: 1>} : vector<8x128xi32>
    %c1_i32 = arith.constant 1 : i32
    %141 = arith.addi %0, %c1_i32 : i32
    %c1664525_i32 = arith.constant 1664525 : i32
    %142 = vector.broadcast %c1664525_i32 : i32 to vector<8x128xi32>
    %143 = arith.muli %139, %142 : vector<8x128xi32>
    %144 = vector.broadcast %141 : i32 to vector<8x128xi32>
    %145 = arith.addi %144, %143 : vector<8x128xi32>
    %c1013904223_i32 = arith.constant 1013904223 : i32
    %146 = vector.broadcast %c1013904223_i32 : i32 to vector<8x128xi32>
    %147 = arith.muli %140, %146 : vector<8x128xi32>
    %148 = arith.addi %145, %147 : vector<8x128xi32>
    %c13_i32 = arith.constant 13 : i32
    %149 = vector.broadcast %c13_i32 : i32 to vector<8x128xi32>
    %150 = arith.shrsi %148, %149 : vector<8x128xi32>
    %151 = arith.xori %148, %150 : vector<8x128xi32>
    %c656542357_i32 = arith.constant 656542357 : i32
    %152 = vector.broadcast %c656542357_i32 : i32 to vector<8x128xi32>
    %153 = arith.muli %151, %152 : vector<8x128xi32>
    %c17_i32 = arith.constant 17 : i32
    %154 = vector.broadcast %c17_i32 : i32 to vector<8x128xi32>
    %155 = arith.shrsi %153, %154 : vector<8x128xi32>
    %156 = arith.xori %153, %155 : vector<8x128xi32>
    %c16777619_i32 = arith.constant 16777619 : i32
    %157 = vector.broadcast %c16777619_i32 : i32 to vector<8x128xi32>
    %158 = arith.muli %156, %157 : vector<8x128xi32>
    %c5_i32 = arith.constant 5 : i32
    %159 = vector.broadcast %c5_i32 : i32 to vector<8x128xi32>
    %160 = arith.shrsi %158, %159 : vector<8x128xi32>
    %161 = arith.xori %158, %160 : vector<8x128xi32>
    %c2147483647_i32 = arith.constant 2147483647 : i32
    %162 = vector.broadcast %c2147483647_i32 : i32 to vector<8x128xi32>
    %163 = arith.andi %161, %162 : vector<8x128xi32>
    %c1073741824_i32 = arith.constant 1073741824 : i32
    %164 = vector.broadcast %c1073741824_i32 : i32 to vector<8x128xi32>
    %165 = arith.cmpi slt, %163, %164 : vector<8x128xi32>
    %cst_39 = arith.constant 2.000000e+00 : f32
    %166 = vector.broadcast %cst_39 : f32 to vector<8x128xf32>
    %167 = arith.mulf %138, %166 : vector<8x128xf32>
    %cst_40 = arith.constant 0.000000e+00 : f32
    %168 = vector.broadcast %cst_40 : f32 to vector<8x128xf32>
    %169 = arith.select %165, %167, %168 : vector<8x128xi1>, vector<8x128xf32>
    %c0_41 = arith.constant 0 : index
    %c0_42 = arith.constant 0 : index
    %170 = vector.load %arg4[%c0_41, %c0_42] : memref<128x264xf32, #tpu.memory_space<vmem>>, vector<128x264xf32>
    %c2 = arith.constant 2 : index
    %c0_43 = arith.constant 0 : index
    %171 = vector.load %arg9[%c2, %c0_43] : memref<16x128xf32, #tpu.memory_space<vmem>>, vector<1x64xf32>
    %c3 = arith.constant 3 : index
    %c0_44 = arith.constant 0 : index
    %172 = vector.load %arg9[%c3, %c0_44] : memref<16x128xf32, #tpu.memory_space<vmem>>, vector<1x64xf32>
    %cst_45 = arith.constant dense<0.000000e+00> : vector<8x264xf32>
    %173 = tpu.matmul %169, %170, %cst_45 {dimension_numbers = #tpu.dot_dimension_numbers<[1], [0], [0], [1], [0, 0, 1, 1], [], []>} : vector<8x128xf32>, vector<128x264xf32>, vector<8x264xf32> -> vector<8x264xf32>
    %174 = vector.extract_strided_slice %173 {offsets = [0, 256], sizes = [8, 1], strides = [1, 1]} : vector<8x264xf32> to vector<8x1xf32>
    %175 = vector.extract_strided_slice %173 {offsets = [0, 260], sizes = [8, 1], strides = [1, 1]} : vector<8x264xf32> to vector<8x1xf32>
    %176 = tpu.transpose %174, [1, 0] : vector<8x1xf32> -> vector<1x8xf32>
    %177 = vector.broadcast %175 : vector<8x1xf32> to vector<8x8xf32>
    %178 = vector.broadcast %176 : vector<1x8xf32> to vector<8x8xf32>
    %179 = arith.addf %177, %178 : vector<8x8xf32>
    %cst_46 = arith.constant 0.000000e+00 : f32
    %180 = vector.broadcast %cst_46 : f32 to vector<8x8xf32>
    %181 = arith.cmpf ogt, %179, %180 : vector<8x8xf32>
    %cst_47 = arith.constant 2.000000e-01 : f32
    %182 = vector.broadcast %cst_47 : f32 to vector<8x8xf32>
    %183 = arith.mulf %182, %179 : vector<8x8xf32>
    %184 = arith.select %181, %179, %183 : vector<8x8xi1>, vector<8x8xf32>
    %185 = arith.addf %184, %7 : vector<8x8xf32>
    %cst_48 = arith.constant dense<0xFF800000> : vector<8xf32>
    %186 = vector.multi_reduction <maximumf>, %185, %cst_48 [1] : vector<8x8xf32> to vector<8xf32>
    %187 = vector.shape_cast %186 : vector<8xf32> to vector<8x1xf32>
    %188 = vector.broadcast %187 : vector<8x1xf32> to vector<8x8xf32>
    %189 = arith.subf %185, %188 : vector<8x8xf32>
    %190 = math.exp %189 : vector<8x8xf32>
    %cst_49 = arith.constant dense<0.000000e+00> : vector<8xf32>
    %191 = vector.multi_reduction <add>, %190, %cst_49 [1] : vector<8x8xf32> to vector<8xf32>
    %192 = vector.shape_cast %191 : vector<8xf32> to vector<8x1xf32>
    %193 = tpu.reciprocal %192 {approx = true} : vector<8x1xf32> -> vector<8x1xf32>
    %194 = vector.broadcast %193 : vector<8x1xf32> to vector<8x8xf32>
    %195 = arith.mulf %190, %194 : vector<8x8xf32>
    %196 = vector.extract_strided_slice %173 {offsets = [0, 0], sizes = [8, 64], strides = [1, 1]} : vector<8x264xf32> to vector<8x64xf32>
    %cst_50 = arith.constant dense<0.000000e+00> : vector<8x64xf32>
    %197 = tpu.matmul %195, %196, %cst_50 {dimension_numbers = #tpu.dot_dimension_numbers<[1], [0], [0], [1], [0, 0, 1, 1], [], []>} : vector<8x8xf32>, vector<8x64xf32>, vector<8x64xf32> -> vector<8x64xf32>
    %198 = vector.extract_strided_slice %173 {offsets = [0, 257], sizes = [8, 1], strides = [1, 1]} : vector<8x264xf32> to vector<8x1xf32>
    %199 = vector.extract_strided_slice %173 {offsets = [0, 261], sizes = [8, 1], strides = [1, 1]} : vector<8x264xf32> to vector<8x1xf32>
    %200 = tpu.transpose %198, [1, 0] : vector<8x1xf32> -> vector<1x8xf32>
    %201 = vector.broadcast %199 : vector<8x1xf32> to vector<8x8xf32>
    %202 = vector.broadcast %200 : vector<1x8xf32> to vector<8x8xf32>
    %203 = arith.addf %201, %202 : vector<8x8xf32>
    %cst_51 = arith.constant 0.000000e+00 : f32
    %204 = vector.broadcast %cst_51 : f32 to vector<8x8xf32>
    %205 = arith.cmpf ogt, %203, %204 : vector<8x8xf32>
    %cst_52 = arith.constant 2.000000e-01 : f32
    %206 = vector.broadcast %cst_52 : f32 to vector<8x8xf32>
    %207 = arith.mulf %206, %203 : vector<8x8xf32>
    %208 = arith.select %205, %203, %207 : vector<8x8xi1>, vector<8x8xf32>
    %209 = arith.addf %208, %7 : vector<8x8xf32>
    %cst_53 = arith.constant dense<0xFF800000> : vector<8xf32>
    %210 = vector.multi_reduction <maximumf>, %209, %cst_53 [1] : vector<8x8xf32> to vector<8xf32>
    %211 = vector.shape_cast %210 : vector<8xf32> to vector<8x1xf32>
    %212 = vector.broadcast %211 : vector<8x1xf32> to vector<8x8xf32>
    %213 = arith.subf %209, %212 : vector<8x8xf32>
    %214 = math.exp %213 : vector<8x8xf32>
    %cst_54 = arith.constant dense<0.000000e+00> : vector<8xf32>
    %215 = vector.multi_reduction <add>, %214, %cst_54 [1] : vector<8x8xf32> to vector<8xf32>
    %216 = vector.shape_cast %215 : vector<8xf32> to vector<8x1xf32>
    %217 = tpu.reciprocal %216 {approx = true} : vector<8x1xf32> -> vector<8x1xf32>
    %218 = vector.broadcast %217 : vector<8x1xf32> to vector<8x8xf32>
    %219 = arith.mulf %214, %218 : vector<8x8xf32>
    %220 = vector.extract_strided_slice %173 {offsets = [0, 64], sizes = [8, 64], strides = [1, 1]} : vector<8x264xf32> to vector<8x64xf32>
    %cst_55 = arith.constant dense<0.000000e+00> : vector<8x64xf32>
    %221 = tpu.matmul %219, %220, %cst_55 {dimension_numbers = #tpu.dot_dimension_numbers<[1], [0], [0], [1], [0, 0, 1, 1], [], []>} : vector<8x8xf32>, vector<8x64xf32>, vector<8x64xf32> -> vector<8x64xf32>
    %222 = arith.addf %197, %221 : vector<8x64xf32>
    %223 = vector.extract_strided_slice %173 {offsets = [0, 258], sizes = [8, 1], strides = [1, 1]} : vector<8x264xf32> to vector<8x1xf32>
    %224 = vector.extract_strided_slice %173 {offsets = [0, 262], sizes = [8, 1], strides = [1, 1]} : vector<8x264xf32> to vector<8x1xf32>
    %225 = tpu.transpose %223, [1, 0] : vector<8x1xf32> -> vector<1x8xf32>
    %226 = vector.broadcast %224 : vector<8x1xf32> to vector<8x8xf32>
    %227 = vector.broadcast %225 : vector<1x8xf32> to vector<8x8xf32>
    %228 = arith.addf %226, %227 : vector<8x8xf32>
    %cst_56 = arith.constant 0.000000e+00 : f32
    %229 = vector.broadcast %cst_56 : f32 to vector<8x8xf32>
    %230 = arith.cmpf ogt, %228, %229 : vector<8x8xf32>
    %cst_57 = arith.constant 2.000000e-01 : f32
    %231 = vector.broadcast %cst_57 : f32 to vector<8x8xf32>
    %232 = arith.mulf %231, %228 : vector<8x8xf32>
    %233 = arith.select %230, %228, %232 : vector<8x8xi1>, vector<8x8xf32>
    %234 = arith.addf %233, %7 : vector<8x8xf32>
    %cst_58 = arith.constant dense<0xFF800000> : vector<8xf32>
    %235 = vector.multi_reduction <maximumf>, %234, %cst_58 [1] : vector<8x8xf32> to vector<8xf32>
    %236 = vector.shape_cast %235 : vector<8xf32> to vector<8x1xf32>
    %237 = vector.broadcast %236 : vector<8x1xf32> to vector<8x8xf32>
    %238 = arith.subf %234, %237 : vector<8x8xf32>
    %239 = math.exp %238 : vector<8x8xf32>
    %cst_59 = arith.constant dense<0.000000e+00> : vector<8xf32>
    %240 = vector.multi_reduction <add>, %239, %cst_59 [1] : vector<8x8xf32> to vector<8xf32>
    %241 = vector.shape_cast %240 : vector<8xf32> to vector<8x1xf32>
    %242 = tpu.reciprocal %241 {approx = true} : vector<8x1xf32> -> vector<8x1xf32>
    %243 = vector.broadcast %242 : vector<8x1xf32> to vector<8x8xf32>
    %244 = arith.mulf %239, %243 : vector<8x8xf32>
    %245 = vector.extract_strided_slice %173 {offsets = [0, 128], sizes = [8, 64], strides = [1, 1]} : vector<8x264xf32> to vector<8x64xf32>
    %cst_60 = arith.constant dense<0.000000e+00> : vector<8x64xf32>
    %246 = tpu.matmul %244, %245, %cst_60 {dimension_numbers = #tpu.dot_dimension_numbers<[1], [0], [0], [1], [0, 0, 1, 1], [], []>} : vector<8x8xf32>, vector<8x64xf32>, vector<8x64xf32> -> vector<8x64xf32>
    %247 = arith.addf %222, %246 : vector<8x64xf32>
    %248 = vector.extract_strided_slice %173 {offsets = [0, 259], sizes = [8, 1], strides = [1, 1]} : vector<8x264xf32> to vector<8x1xf32>
    %249 = vector.extract_strided_slice %173 {offsets = [0, 263], sizes = [8, 1], strides = [1, 1]} : vector<8x264xf32> to vector<8x1xf32>
    %250 = tpu.transpose %248, [1, 0] : vector<8x1xf32> -> vector<1x8xf32>
    %251 = vector.broadcast %249 : vector<8x1xf32> to vector<8x8xf32>
    %252 = vector.broadcast %250 : vector<1x8xf32> to vector<8x8xf32>
    %253 = arith.addf %251, %252 : vector<8x8xf32>
    %cst_61 = arith.constant 0.000000e+00 : f32
    %254 = vector.broadcast %cst_61 : f32 to vector<8x8xf32>
    %255 = arith.cmpf ogt, %253, %254 : vector<8x8xf32>
    %cst_62 = arith.constant 2.000000e-01 : f32
    %256 = vector.broadcast %cst_62 : f32 to vector<8x8xf32>
    %257 = arith.mulf %256, %253 : vector<8x8xf32>
    %258 = arith.select %255, %253, %257 : vector<8x8xi1>, vector<8x8xf32>
    %259 = arith.addf %258, %7 : vector<8x8xf32>
    %cst_63 = arith.constant dense<0xFF800000> : vector<8xf32>
    %260 = vector.multi_reduction <maximumf>, %259, %cst_63 [1] : vector<8x8xf32> to vector<8xf32>
    %261 = vector.shape_cast %260 : vector<8xf32> to vector<8x1xf32>
    %262 = vector.broadcast %261 : vector<8x1xf32> to vector<8x8xf32>
    %263 = arith.subf %259, %262 : vector<8x8xf32>
    %264 = math.exp %263 : vector<8x8xf32>
    %cst_64 = arith.constant dense<0.000000e+00> : vector<8xf32>
    %265 = vector.multi_reduction <add>, %264, %cst_64 [1] : vector<8x8xf32> to vector<8xf32>
    %266 = vector.shape_cast %265 : vector<8xf32> to vector<8x1xf32>
    %267 = tpu.reciprocal %266 {approx = true} : vector<8x1xf32> -> vector<8x1xf32>
    %268 = vector.broadcast %267 : vector<8x1xf32> to vector<8x8xf32>
    %269 = arith.mulf %264, %268 : vector<8x8xf32>
    %270 = vector.extract_strided_slice %173 {offsets = [0, 192], sizes = [8, 64], strides = [1, 1]} : vector<8x264xf32> to vector<8x64xf32>
    %cst_65 = arith.constant dense<0.000000e+00> : vector<8x64xf32>
    %271 = tpu.matmul %269, %270, %cst_65 {dimension_numbers = #tpu.dot_dimension_numbers<[1], [0], [0], [1], [0, 0, 1, 1], [], []>} : vector<8x8xf32>, vector<8x64xf32>, vector<8x64xf32> -> vector<8x64xf32>
    %272 = arith.addf %247, %271 : vector<8x64xf32>
    %cst_66 = arith.constant dense<0.000000e+00> : vector<64xf32>
    %273 = vector.multi_reduction <add>, %272, %cst_66 [0] : vector<8x64xf32> to vector<64xf32>
    %274 = vector.shape_cast %273 : vector<64xf32> to vector<1x64xf32>
    %cst_67 = arith.constant 8.000000e+00 : f32
    %275 = vector.broadcast %cst_67 : f32 to vector<1x64xf32>
    %276 = arith.divf %274, %275 : vector<1x64xf32>
    %277 = vector.broadcast %276 : vector<1x64xf32> to vector<8x64xf32>
    %278 = arith.subf %272, %277 : vector<8x64xf32>
    %279 = arith.mulf %278, %278 : vector<8x64xf32>
    %cst_68 = arith.constant dense<0.000000e+00> : vector<64xf32>
    %280 = vector.multi_reduction <add>, %279, %cst_68 [0] : vector<8x64xf32> to vector<64xf32>
    %281 = vector.shape_cast %280 : vector<64xf32> to vector<1x64xf32>
    %cst_69 = arith.constant 8.000000e+00 : f32
    %282 = vector.broadcast %cst_69 : f32 to vector<1x64xf32>
    %283 = arith.divf %281, %282 : vector<1x64xf32>
    %284 = vector.broadcast %276 : vector<1x64xf32> to vector<8x64xf32>
    %285 = arith.subf %272, %284 : vector<8x64xf32>
    %cst_70 = arith.constant 1.600000e-04 : f32
    %286 = vector.broadcast %cst_70 : f32 to vector<1x64xf32>
    %287 = arith.addf %283, %286 : vector<1x64xf32>
    %288 = math.rsqrt %287 : vector<1x64xf32>
    %289 = vector.broadcast %288 : vector<1x64xf32> to vector<8x64xf32>
    %290 = arith.mulf %285, %289 : vector<8x64xf32>
    %291 = vector.broadcast %171 : vector<1x64xf32> to vector<8x64xf32>
    %292 = arith.mulf %290, %291 : vector<8x64xf32>
    %293 = vector.broadcast %172 : vector<1x64xf32> to vector<8x64xf32>
    %294 = arith.addf %292, %293 : vector<8x64xf32>
    %cst_71 = arith.constant 0.000000e+00 : f32
    %295 = vector.broadcast %cst_71 : f32 to vector<8x64xf32>
    %296 = arith.cmpf ogt, %294, %295 : vector<8x64xf32>
    %297 = math.exp %294 : vector<8x64xf32>
    %cst_72 = arith.constant 1.000000e+00 : f32
    %298 = vector.broadcast %cst_72 : f32 to vector<8x64xf32>
    %299 = arith.subf %297, %298 : vector<8x64xf32>
    %300 = arith.select %296, %294, %299 : vector<8x64xi1>, vector<8x64xf32>
    %301 = tpu.iota {dimensions = array<i32: 0>} : vector<8x64xi32>
    %302 = tpu.iota {dimensions = array<i32: 1>} : vector<8x64xi32>
    %c2_i32 = arith.constant 2 : i32
    %303 = arith.addi %0, %c2_i32 : i32
    %c1664525_i32_73 = arith.constant 1664525 : i32
    %304 = vector.broadcast %c1664525_i32_73 : i32 to vector<8x64xi32>
    %305 = arith.muli %301, %304 : vector<8x64xi32>
    %306 = vector.broadcast %303 : i32 to vector<8x64xi32>
    %307 = arith.addi %306, %305 : vector<8x64xi32>
    %c1013904223_i32_74 = arith.constant 1013904223 : i32
    %308 = vector.broadcast %c1013904223_i32_74 : i32 to vector<8x64xi32>
    %309 = arith.muli %302, %308 : vector<8x64xi32>
    %310 = arith.addi %307, %309 : vector<8x64xi32>
    %c13_i32_75 = arith.constant 13 : i32
    %311 = vector.broadcast %c13_i32_75 : i32 to vector<8x64xi32>
    %312 = arith.shrsi %310, %311 : vector<8x64xi32>
    %313 = arith.xori %310, %312 : vector<8x64xi32>
    %c656542357_i32_76 = arith.constant 656542357 : i32
    %314 = vector.broadcast %c656542357_i32_76 : i32 to vector<8x64xi32>
    %315 = arith.muli %313, %314 : vector<8x64xi32>
    %c17_i32_77 = arith.constant 17 : i32
    %316 = vector.broadcast %c17_i32_77 : i32 to vector<8x64xi32>
    %317 = arith.shrsi %315, %316 : vector<8x64xi32>
    %318 = arith.xori %315, %317 : vector<8x64xi32>
    %c16777619_i32_78 = arith.constant 16777619 : i32
    %319 = vector.broadcast %c16777619_i32_78 : i32 to vector<8x64xi32>
    %320 = arith.muli %318, %319 : vector<8x64xi32>
    %c5_i32_79 = arith.constant 5 : i32
    %321 = vector.broadcast %c5_i32_79 : i32 to vector<8x64xi32>
    %322 = arith.shrsi %320, %321 : vector<8x64xi32>
    %323 = arith.xori %320, %322 : vector<8x64xi32>
    %c2147483647_i32_80 = arith.constant 2147483647 : i32
    %324 = vector.broadcast %c2147483647_i32_80 : i32 to vector<8x64xi32>
    %325 = arith.andi %323, %324 : vector<8x64xi32>
    %c1073741824_i32_81 = arith.constant 1073741824 : i32
    %326 = vector.broadcast %c1073741824_i32_81 : i32 to vector<8x64xi32>
    %327 = arith.cmpi slt, %325, %326 : vector<8x64xi32>
    %cst_82 = arith.constant 2.000000e+00 : f32
    %328 = vector.broadcast %cst_82 : f32 to vector<8x64xf32>
    %329 = arith.mulf %300, %328 : vector<8x64xf32>
    %cst_83 = arith.constant 0.000000e+00 : f32
    %330 = vector.broadcast %cst_83 : f32 to vector<8x64xf32>
    %331 = arith.select %327, %329, %330 : vector<8x64xi1>, vector<8x64xf32>
    %c0_84 = arith.constant 0 : index
    %c0_85 = arith.constant 0 : index
    %332 = vector.load %arg5[%c0_84, %c0_85] : memref<64x136xf32, #tpu.memory_space<vmem>>, vector<64x136xf32>
    %c4 = arith.constant 4 : index
    %c0_86 = arith.constant 0 : index
    %333 = vector.load %arg9[%c4, %c0_86] : memref<16x128xf32, #tpu.memory_space<vmem>>, vector<1x32xf32>
    %c5 = arith.constant 5 : index
    %c0_87 = arith.constant 0 : index
    %334 = vector.load %arg9[%c5, %c0_87] : memref<16x128xf32, #tpu.memory_space<vmem>>, vector<1x32xf32>
    %cst_88 = arith.constant dense<0.000000e+00> : vector<8x136xf32>
    %335 = tpu.matmul %331, %332, %cst_88 {dimension_numbers = #tpu.dot_dimension_numbers<[1], [0], [0], [1], [0, 0, 1, 1], [], []>} : vector<8x64xf32>, vector<64x136xf32>, vector<8x136xf32> -> vector<8x136xf32>
    %336 = vector.extract_strided_slice %335 {offsets = [0, 128], sizes = [8, 1], strides = [1, 1]} : vector<8x136xf32> to vector<8x1xf32>
    %337 = vector.extract_strided_slice %335 {offsets = [0, 132], sizes = [8, 1], strides = [1, 1]} : vector<8x136xf32> to vector<8x1xf32>
    %338 = tpu.transpose %336, [1, 0] : vector<8x1xf32> -> vector<1x8xf32>
    %339 = vector.broadcast %337 : vector<8x1xf32> to vector<8x8xf32>
    %340 = vector.broadcast %338 : vector<1x8xf32> to vector<8x8xf32>
    %341 = arith.addf %339, %340 : vector<8x8xf32>
    %cst_89 = arith.constant 0.000000e+00 : f32
    %342 = vector.broadcast %cst_89 : f32 to vector<8x8xf32>
    %343 = arith.cmpf ogt, %341, %342 : vector<8x8xf32>
    %cst_90 = arith.constant 2.000000e-01 : f32
    %344 = vector.broadcast %cst_90 : f32 to vector<8x8xf32>
    %345 = arith.mulf %344, %341 : vector<8x8xf32>
    %346 = arith.select %343, %341, %345 : vector<8x8xi1>, vector<8x8xf32>
    %347 = arith.addf %346, %7 : vector<8x8xf32>
    %cst_91 = arith.constant dense<0xFF800000> : vector<8xf32>
    %348 = vector.multi_reduction <maximumf>, %347, %cst_91 [1] : vector<8x8xf32> to vector<8xf32>
    %349 = vector.shape_cast %348 : vector<8xf32> to vector<8x1xf32>
    %350 = vector.broadcast %349 : vector<8x1xf32> to vector<8x8xf32>
    %351 = arith.subf %347, %350 : vector<8x8xf32>
    %352 = math.exp %351 : vector<8x8xf32>
    %cst_92 = arith.constant dense<0.000000e+00> : vector<8xf32>
    %353 = vector.multi_reduction <add>, %352, %cst_92 [1] : vector<8x8xf32> to vector<8xf32>
    %354 = vector.shape_cast %353 : vector<8xf32> to vector<8x1xf32>
    %355 = tpu.reciprocal %354 {approx = true} : vector<8x1xf32> -> vector<8x1xf32>
    %356 = vector.broadcast %355 : vector<8x1xf32> to vector<8x8xf32>
    %357 = arith.mulf %352, %356 : vector<8x8xf32>
    %358 = vector.extract_strided_slice %335 {offsets = [0, 0], sizes = [8, 32], strides = [1, 1]} : vector<8x136xf32> to vector<8x32xf32>
    %cst_93 = arith.constant dense<0.000000e+00> : vector<8x32xf32>
    %359 = tpu.matmul %357, %358, %cst_93 {dimension_numbers = #tpu.dot_dimension_numbers<[1], [0], [0], [1], [0, 0, 1, 1], [], []>} : vector<8x8xf32>, vector<8x32xf32>, vector<8x32xf32> -> vector<8x32xf32>
    %360 = vector.extract_strided_slice %335 {offsets = [0, 129], sizes = [8, 1], strides = [1, 1]} : vector<8x136xf32> to vector<8x1xf32>
    %361 = vector.extract_strided_slice %335 {offsets = [0, 133], sizes = [8, 1], strides = [1, 1]} : vector<8x136xf32> to vector<8x1xf32>
    %362 = tpu.transpose %360, [1, 0] : vector<8x1xf32> -> vector<1x8xf32>
    %363 = vector.broadcast %361 : vector<8x1xf32> to vector<8x8xf32>
    %364 = vector.broadcast %362 : vector<1x8xf32> to vector<8x8xf32>
    %365 = arith.addf %363, %364 : vector<8x8xf32>
    %cst_94 = arith.constant 0.000000e+00 : f32
    %366 = vector.broadcast %cst_94 : f32 to vector<8x8xf32>
    %367 = arith.cmpf ogt, %365, %366 : vector<8x8xf32>
    %cst_95 = arith.constant 2.000000e-01 : f32
    %368 = vector.broadcast %cst_95 : f32 to vector<8x8xf32>
    %369 = arith.mulf %368, %365 : vector<8x8xf32>
    %370 = arith.select %367, %365, %369 : vector<8x8xi1>, vector<8x8xf32>
    %371 = arith.addf %370, %7 : vector<8x8xf32>
    %cst_96 = arith.constant dense<0xFF800000> : vector<8xf32>
    %372 = vector.multi_reduction <maximumf>, %371, %cst_96 [1] : vector<8x8xf32> to vector<8xf32>
    %373 = vector.shape_cast %372 : vector<8xf32> to vector<8x1xf32>
    %374 = vector.broadcast %373 : vector<8x1xf32> to vector<8x8xf32>
    %375 = arith.subf %371, %374 : vector<8x8xf32>
    %376 = math.exp %375 : vector<8x8xf32>
    %cst_97 = arith.constant dense<0.000000e+00> : vector<8xf32>
    %377 = vector.multi_reduction <add>, %376, %cst_97 [1] : vector<8x8xf32> to vector<8xf32>
    %378 = vector.shape_cast %377 : vector<8xf32> to vector<8x1xf32>
    %379 = tpu.reciprocal %378 {approx = true} : vector<8x1xf32> -> vector<8x1xf32>
    %380 = vector.broadcast %379 : vector<8x1xf32> to vector<8x8xf32>
    %381 = arith.mulf %376, %380 : vector<8x8xf32>
    %382 = vector.extract_strided_slice %335 {offsets = [0, 32], sizes = [8, 32], strides = [1, 1]} : vector<8x136xf32> to vector<8x32xf32>
    %cst_98 = arith.constant dense<0.000000e+00> : vector<8x32xf32>
    %383 = tpu.matmul %381, %382, %cst_98 {dimension_numbers = #tpu.dot_dimension_numbers<[1], [0], [0], [1], [0, 0, 1, 1], [], []>} : vector<8x8xf32>, vector<8x32xf32>, vector<8x32xf32> -> vector<8x32xf32>
    %384 = arith.addf %359, %383 : vector<8x32xf32>
    %385 = vector.extract_strided_slice %335 {offsets = [0, 130], sizes = [8, 1], strides = [1, 1]} : vector<8x136xf32> to vector<8x1xf32>
    %386 = vector.extract_strided_slice %335 {offsets = [0, 134], sizes = [8, 1], strides = [1, 1]} : vector<8x136xf32> to vector<8x1xf32>
    %387 = tpu.transpose %385, [1, 0] : vector<8x1xf32> -> vector<1x8xf32>
    %388 = vector.broadcast %386 : vector<8x1xf32> to vector<8x8xf32>
    %389 = vector.broadcast %387 : vector<1x8xf32> to vector<8x8xf32>
    %390 = arith.addf %388, %389 : vector<8x8xf32>
    %cst_99 = arith.constant 0.000000e+00 : f32
    %391 = vector.broadcast %cst_99 : f32 to vector<8x8xf32>
    %392 = arith.cmpf ogt, %390, %391 : vector<8x8xf32>
    %cst_100 = arith.constant 2.000000e-01 : f32
    %393 = vector.broadcast %cst_100 : f32 to vector<8x8xf32>
    %394 = arith.mulf %393, %390 : vector<8x8xf32>
    %395 = arith.select %392, %390, %394 : vector<8x8xi1>, vector<8x8xf32>
    %396 = arith.addf %395, %7 : vector<8x8xf32>
    %cst_101 = arith.constant dense<0xFF800000> : vector<8xf32>
    %397 = vector.multi_reduction <maximumf>, %396, %cst_101 [1] : vector<8x8xf32> to vector<8xf32>
    %398 = vector.shape_cast %397 : vector<8xf32> to vector<8x1xf32>
    %399 = vector.broadcast %398 : vector<8x1xf32> to vector<8x8xf32>
    %400 = arith.subf %396, %399 : vector<8x8xf32>
    %401 = math.exp %400 : vector<8x8xf32>
    %cst_102 = arith.constant dense<0.000000e+00> : vector<8xf32>
    %402 = vector.multi_reduction <add>, %401, %cst_102 [1] : vector<8x8xf32> to vector<8xf32>
    %403 = vector.shape_cast %402 : vector<8xf32> to vector<8x1xf32>
    %404 = tpu.reciprocal %403 {approx = true} : vector<8x1xf32> -> vector<8x1xf32>
    %405 = vector.broadcast %404 : vector<8x1xf32> to vector<8x8xf32>
    %406 = arith.mulf %401, %405 : vector<8x8xf32>
    %407 = vector.extract_strided_slice %335 {offsets = [0, 64], sizes = [8, 32], strides = [1, 1]} : vector<8x136xf32> to vector<8x32xf32>
    %cst_103 = arith.constant dense<0.000000e+00> : vector<8x32xf32>
    %408 = tpu.matmul %406, %407, %cst_103 {dimension_numbers = #tpu.dot_dimension_numbers<[1], [0], [0], [1], [0, 0, 1, 1], [], []>} : vector<8x8xf32>, vector<8x32xf32>, vector<8x32xf32> -> vector<8x32xf32>
    %409 = arith.addf %384, %408 : vector<8x32xf32>
    %410 = vector.extract_strided_slice %335 {offsets = [0, 131], sizes = [8, 1], strides = [1, 1]} : vector<8x136xf32> to vector<8x1xf32>
    %411 = vector.extract_strided_slice %335 {offsets = [0, 135], sizes = [8, 1], strides = [1, 1]} : vector<8x136xf32> to vector<8x1xf32>
    %412 = tpu.transpose %410, [1, 0] : vector<8x1xf32> -> vector<1x8xf32>
    %413 = vector.broadcast %411 : vector<8x1xf32> to vector<8x8xf32>
    %414 = vector.broadcast %412 : vector<1x8xf32> to vector<8x8xf32>
    %415 = arith.addf %413, %414 : vector<8x8xf32>
    %cst_104 = arith.constant 0.000000e+00 : f32
    %416 = vector.broadcast %cst_104 : f32 to vector<8x8xf32>
    %417 = arith.cmpf ogt, %415, %416 : vector<8x8xf32>
    %cst_105 = arith.constant 2.000000e-01 : f32
    %418 = vector.broadcast %cst_105 : f32 to vector<8x8xf32>
    %419 = arith.mulf %418, %415 : vector<8x8xf32>
    %420 = arith.select %417, %415, %419 : vector<8x8xi1>, vector<8x8xf32>
    %421 = arith.addf %420, %7 : vector<8x8xf32>
    %cst_106 = arith.constant dense<0xFF800000> : vector<8xf32>
    %422 = vector.multi_reduction <maximumf>, %421, %cst_106 [1] : vector<8x8xf32> to vector<8xf32>
    %423 = vector.shape_cast %422 : vector<8xf32> to vector<8x1xf32>
    %424 = vector.broadcast %423 : vector<8x1xf32> to vector<8x8xf32>
    %425 = arith.subf %421, %424 : vector<8x8xf32>
    %426 = math.exp %425 : vector<8x8xf32>
    %cst_107 = arith.constant dense<0.000000e+00> : vector<8xf32>
    %427 = vector.multi_reduction <add>, %426, %cst_107 [1] : vector<8x8xf32> to vector<8xf32>
    %428 = vector.shape_cast %427 : vector<8xf32> to vector<8x1xf32>
    %429 = tpu.reciprocal %428 {approx = true} : vector<8x1xf32> -> vector<8x1xf32>
    %430 = vector.broadcast %429 : vector<8x1xf32> to vector<8x8xf32>
    %431 = arith.mulf %426, %430 : vector<8x8xf32>
    %432 = vector.extract_strided_slice %335 {offsets = [0, 96], sizes = [8, 32], strides = [1, 1]} : vector<8x136xf32> to vector<8x32xf32>
    %cst_108 = arith.constant dense<0.000000e+00> : vector<8x32xf32>
    %433 = tpu.matmul %431, %432, %cst_108 {dimension_numbers = #tpu.dot_dimension_numbers<[1], [0], [0], [1], [0, 0, 1, 1], [], []>} : vector<8x8xf32>, vector<8x32xf32>, vector<8x32xf32> -> vector<8x32xf32>
    %434 = arith.addf %409, %433 : vector<8x32xf32>
    %cst_109 = arith.constant dense<0.000000e+00> : vector<32xf32>
    %435 = vector.multi_reduction <add>, %434, %cst_109 [0] : vector<8x32xf32> to vector<32xf32>
    %436 = vector.shape_cast %435 : vector<32xf32> to vector<1x32xf32>
    %cst_110 = arith.constant 8.000000e+00 : f32
    %437 = vector.broadcast %cst_110 : f32 to vector<1x32xf32>
    %438 = arith.divf %436, %437 : vector<1x32xf32>
    %439 = vector.broadcast %438 : vector<1x32xf32> to vector<8x32xf32>
    %440 = arith.subf %434, %439 : vector<8x32xf32>
    %441 = arith.mulf %440, %440 : vector<8x32xf32>
    %cst_111 = arith.constant dense<0.000000e+00> : vector<32xf32>
    %442 = vector.multi_reduction <add>, %441, %cst_111 [0] : vector<8x32xf32> to vector<32xf32>
    %443 = vector.shape_cast %442 : vector<32xf32> to vector<1x32xf32>
    %cst_112 = arith.constant 8.000000e+00 : f32
    %444 = vector.broadcast %cst_112 : f32 to vector<1x32xf32>
    %445 = arith.divf %443, %444 : vector<1x32xf32>
    %446 = vector.broadcast %438 : vector<1x32xf32> to vector<8x32xf32>
    %447 = arith.subf %434, %446 : vector<8x32xf32>
    %cst_113 = arith.constant 1.600000e-04 : f32
    %448 = vector.broadcast %cst_113 : f32 to vector<1x32xf32>
    %449 = arith.addf %445, %448 : vector<1x32xf32>
    %450 = math.rsqrt %449 : vector<1x32xf32>
    %451 = vector.broadcast %450 : vector<1x32xf32> to vector<8x32xf32>
    %452 = arith.mulf %447, %451 : vector<8x32xf32>
    %453 = vector.broadcast %333 : vector<1x32xf32> to vector<8x32xf32>
    %454 = arith.mulf %452, %453 : vector<8x32xf32>
    %455 = vector.broadcast %334 : vector<1x32xf32> to vector<8x32xf32>
    %456 = arith.addf %454, %455 : vector<8x32xf32>
    %457 = tpu.iota {dimensions = array<i32: 0>} : vector<8x32xi32>
    %458 = tpu.iota {dimensions = array<i32: 1>} : vector<8x32xi32>
    %c3_i32 = arith.constant 3 : i32
    %459 = arith.addi %0, %c3_i32 : i32
    %c1664525_i32_114 = arith.constant 1664525 : i32
    %460 = vector.broadcast %c1664525_i32_114 : i32 to vector<8x32xi32>
    %461 = arith.muli %457, %460 : vector<8x32xi32>
    %462 = vector.broadcast %459 : i32 to vector<8x32xi32>
    %463 = arith.addi %462, %461 : vector<8x32xi32>
    %c1013904223_i32_115 = arith.constant 1013904223 : i32
    %464 = vector.broadcast %c1013904223_i32_115 : i32 to vector<8x32xi32>
    %465 = arith.muli %458, %464 : vector<8x32xi32>
    %466 = arith.addi %463, %465 : vector<8x32xi32>
    %c13_i32_116 = arith.constant 13 : i32
    %467 = vector.broadcast %c13_i32_116 : i32 to vector<8x32xi32>
    %468 = arith.shrsi %466, %467 : vector<8x32xi32>
    %469 = arith.xori %466, %468 : vector<8x32xi32>
    %c656542357_i32_117 = arith.constant 656542357 : i32
    %470 = vector.broadcast %c656542357_i32_117 : i32 to vector<8x32xi32>
    %471 = arith.muli %469, %470 : vector<8x32xi32>
    %c17_i32_118 = arith.constant 17 : i32
    %472 = vector.broadcast %c17_i32_118 : i32 to vector<8x32xi32>
    %473 = arith.shrsi %471, %472 : vector<8x32xi32>
    %474 = arith.xori %471, %473 : vector<8x32xi32>
    %c16777619_i32_119 = arith.constant 16777619 : i32
    %475 = vector.broadcast %c16777619_i32_119 : i32 to vector<8x32xi32>
    %476 = arith.muli %474, %475 : vector<8x32xi32>
    %c5_i32_120 = arith.constant 5 : i32
    %477 = vector.broadcast %c5_i32_120 : i32 to vector<8x32xi32>
    %478 = arith.shrsi %476, %477 : vector<8x32xi32>
    %479 = arith.xori %476, %478 : vector<8x32xi32>
    %c2147483647_i32_121 = arith.constant 2147483647 : i32
    %480 = vector.broadcast %c2147483647_i32_121 : i32 to vector<8x32xi32>
    %481 = arith.andi %479, %480 : vector<8x32xi32>
    %c1073741824_i32_122 = arith.constant 1073741824 : i32
    %482 = vector.broadcast %c1073741824_i32_122 : i32 to vector<8x32xi32>
    %483 = arith.cmpi slt, %481, %482 : vector<8x32xi32>
    %cst_123 = arith.constant 2.000000e+00 : f32
    %484 = vector.broadcast %cst_123 : f32 to vector<8x32xf32>
    %485 = arith.mulf %456, %484 : vector<8x32xf32>
    %cst_124 = arith.constant 0.000000e+00 : f32
    %486 = vector.broadcast %cst_124 : f32 to vector<8x32xf32>
    %487 = arith.select %483, %485, %486 : vector<8x32xi1>, vector<8x32xf32>
    %cst_125 = arith.constant dense<0.000000e+00> : vector<32xf32>
    %488 = vector.multi_reduction <add>, %487, %cst_125 [0] : vector<8x32xf32> to vector<32xf32>
    %489 = vector.shape_cast %488 : vector<32xf32> to vector<1x32xf32>
    %cst_126 = arith.constant 8.000000e+00 : f32
    %490 = vector.broadcast %cst_126 : f32 to vector<1x32xf32>
    %491 = arith.divf %489, %490 : vector<1x32xf32>
    %c0_127 = arith.constant 0 : index
    %c0_128 = arith.constant 0 : index
    %492 = vector.load %arg7[%c0_127, %c0_128] : memref<32x128xf32, #tpu.memory_space<vmem>>, vector<32x128xf32>
    %cst_129 = arith.constant dense<0.000000e+00> : vector<1x128xf32>
    %493 = tpu.matmul %491, %492, %cst_129 {dimension_numbers = #tpu.dot_dimension_numbers<[1], [0], [0], [1], [0, 0, 1, 1], [], []>} : vector<1x32xf32>, vector<32x128xf32>, vector<1x128xf32> -> vector<1x128xf32>
    %c11 = arith.constant 11 : index
    %c0_130 = arith.constant 0 : index
    %494 = vector.load %arg9[%c11, %c0_130] : memref<16x128xf32, #tpu.memory_space<vmem>>, vector<1x128xf32>
    %495 = arith.addf %493, %494 : vector<1x128xf32>
    %c0_131 = arith.constant 0 : index
    %c0_132 = arith.constant 0 : index
    %496 = vector.load %arg8[%c0_131, %c0_132] : memref<128x32xf32, #tpu.memory_space<vmem>>, vector<128x32xf32>
    %cst_133 = arith.constant dense<0.000000e+00> : vector<1x32xf32>
    %497 = tpu.matmul %495, %496, %cst_133 {dimension_numbers = #tpu.dot_dimension_numbers<[1], [0], [0], [1], [0, 0, 1, 1], [], []>} : vector<1x128xf32>, vector<128x32xf32>, vector<1x32xf32> -> vector<1x32xf32>
    %c12 = arith.constant 12 : index
    %c0_134 = arith.constant 0 : index
    %498 = vector.load %arg9[%c12, %c0_134] : memref<16x128xf32, #tpu.memory_space<vmem>>, vector<1x32xf32>
    %499 = arith.addf %497, %498 : vector<1x32xf32>
    %c13 = arith.constant 13 : index
    %c0_135 = arith.constant 0 : index
    %500 = vector.load %arg9[%c13, %c0_135] : memref<16x128xf32, #tpu.memory_space<vmem>>, vector<1x32xf32>
    %501 = arith.mulf %499, %500 : vector<1x32xf32>
    %cst_136 = arith.constant dense<0.000000e+00> : vector<1xf32>
    %502 = vector.multi_reduction <add>, %501, %cst_136 [1] : vector<1x32xf32> to vector<1xf32>
    %503 = vector.shape_cast %502 : vector<1xf32> to vector<1x1xf32>
    %c14 = arith.constant 14 : index
    %c0_137 = arith.constant 0 : index
    %504 = vector.load %arg9[%c14, %c0_137] : memref<16x128xf32, #tpu.memory_space<vmem>>, vector<1x1xf32>
    %505 = arith.addf %503, %504 : vector<1x1xf32>
    %506 = vector.broadcast %491 : vector<1x32xf32> to vector<8x32xf32>
    %507 = arith.mulf %487, %506 : vector<8x32xf32>
    %cst_138 = arith.constant dense<0.000000e+00> : vector<8xf32>
    %508 = vector.multi_reduction <add>, %507, %cst_138 [1] : vector<8x32xf32> to vector<8xf32>
    %509 = vector.shape_cast %508 : vector<8xf32> to vector<8x1xf32>
    %c6 = arith.constant 6 : index
    %c0_139 = arith.constant 0 : index
    %510 = vector.load %arg9[%c6, %c0_139] : memref<16x128xf32, #tpu.memory_space<vmem>>, vector<1x128xf32>
    %511 = vector.broadcast %509 : vector<8x1xf32> to vector<8x128xf32>
    %512 = vector.broadcast %510 : vector<1x128xf32> to vector<8x128xf32>
    %513 = arith.mulf %511, %512 : vector<8x128xf32>
    %c7 = arith.constant 7 : index
    %c0_140 = arith.constant 0 : index
    %514 = vector.load %arg9[%c7, %c0_140] : memref<16x128xf32, #tpu.memory_space<vmem>>, vector<1x128xf32>
    %515 = vector.broadcast %514 : vector<1x128xf32> to vector<8x128xf32>
    %516 = arith.addf %513, %515 : vector<8x128xf32>
    %c0_141 = arith.constant 0 : index
    %c0_142 = arith.constant 0 : index
    %517 = vector.load %arg6[%c0_141, %c0_142] : memref<128x64xf32, #tpu.memory_space<vmem>>, vector<128x64xf32>
    %cst_143 = arith.constant dense<0.000000e+00> : vector<8x64xf32>
    %518 = tpu.matmul %516, %517, %cst_143 {dimension_numbers = #tpu.dot_dimension_numbers<[1], [0], [0], [1], [0, 0, 1, 1], [], []>} : vector<8x128xf32>, vector<128x64xf32>, vector<8x64xf32> -> vector<8x64xf32>
    %c8 = arith.constant 8 : index
    %c0_144 = arith.constant 0 : index
    %519 = vector.load %arg9[%c8, %c0_144] : memref<16x128xf32, #tpu.memory_space<vmem>>, vector<1x64xf32>
    %520 = vector.broadcast %519 : vector<1x64xf32> to vector<8x64xf32>
    %521 = arith.addf %518, %520 : vector<8x64xf32>
    %c9 = arith.constant 9 : index
    %c0_145 = arith.constant 0 : index
    %522 = vector.load %arg9[%c9, %c0_145] : memref<16x128xf32, #tpu.memory_space<vmem>>, vector<1x64xf32>
    %523 = vector.broadcast %522 : vector<1x64xf32> to vector<8x64xf32>
    %524 = arith.mulf %521, %523 : vector<8x64xf32>
    %cst_146 = arith.constant dense<0.000000e+00> : vector<8xf32>
    %525 = vector.multi_reduction <add>, %524, %cst_146 [1] : vector<8x64xf32> to vector<8xf32>
    %526 = vector.shape_cast %525 : vector<8xf32> to vector<8x1xf32>
    %c10 = arith.constant 10 : index
    %c0_147 = arith.constant 0 : index
    %527 = vector.load %arg9[%c10, %c0_147] : memref<16x128xf32, #tpu.memory_space<vmem>>, vector<1x1xf32>
    %528 = vector.broadcast %527 : vector<1x1xf32> to vector<8x1xf32>
    %529 = arith.addf %526, %528 : vector<8x1xf32>
    %530 = math.tanh %529 : vector<8x1xf32>
    %531 = tpu.transpose %530, [1, 0] : vector<8x1xf32> -> vector<1x8xf32>
    %c15 = arith.constant 15 : index
    %c0_148 = arith.constant 0 : index
    %532 = vector.load %arg9[%c15, %c0_148] : memref<16x128xf32, #tpu.memory_space<vmem>>, vector<1x8xf32>
    %cst_149 = arith.constant 0.000000e+00 : f32
    %533 = vector.broadcast %cst_149 : f32 to vector<1x8xf32>
    %534 = arith.cmpf ogt, %532, %533 : vector<1x8xf32>
    %cst_150 = arith.constant -1.000000e+30 : f32
    %535 = vector.broadcast %cst_150 : f32 to vector<1x8xf32>
    %536 = arith.select %534, %531, %535 : vector<1x8xi1>, vector<1x8xf32>
    %cst_151 = arith.constant dense<0xFF800000> : vector<1xf32>
    %537 = vector.multi_reduction <maximumf>, %536, %cst_151 [1] : vector<1x8xf32> to vector<1xf32>
    %538 = vector.shape_cast %537 : vector<1xf32> to vector<1x1xf32>
    %539 = vector.broadcast %538 : vector<1x1xf32> to vector<1x8xf32>
    %540 = arith.subf %536, %539 : vector<1x8xf32>
    %541 = math.exp %540 : vector<1x8xf32>
    %cst_152 = arith.constant dense<0.000000e+00> : vector<1xf32>
    %542 = vector.multi_reduction <add>, %541, %cst_152 [1] : vector<1x8xf32> to vector<1xf32>
    %543 = vector.shape_cast %542 : vector<1xf32> to vector<1x1xf32>
    %544 = vector.broadcast %543 : vector<1x1xf32> to vector<1x8xf32>
    %545 = arith.divf %541, %544 : vector<1x8xf32>
    %546 = vector.broadcast %538 : vector<1x1xf32> to vector<1x8xf32>
    %547 = arith.subf %536, %546 : vector<1x8xf32>
    %548 = math.log %543 : vector<1x1xf32>
    %549 = vector.broadcast %548 : vector<1x1xf32> to vector<1x8xf32>
    %550 = arith.subf %547, %549 : vector<1x8xf32>
    %cst_153 = arith.constant 0.000000e+00 : f32
    %551 = vector.broadcast %cst_153 : f32 to vector<1x120xf32>
    %552 = tpu.concatenate %545, %551 in 1 : vector<1x8xf32>, vector<1x120xf32> -> vector<1x128xf32>
    %c0_154 = arith.constant 0 : index
    %c0_155 = arith.constant 0 : index
    %553 = vector.load %arg10[%c0_154, %c0_155] : memref<3x128xf32, #tpu.memory_space<vmem>>, vector<1x128xf32>
    tpu.vector_store %arg10[%c0_154, %c0_155], %552 {strides = array<i32>} : memref<3x128xf32, #tpu.memory_space<vmem>>, vector<1x128xf32>,
    %554 = tpu.concatenate %550, %551 in 1 : vector<1x8xf32>, vector<1x120xf32> -> vector<1x128xf32>
    %c1_156 = arith.constant 1 : index
    %c0_157 = arith.constant 0 : index
    %555 = vector.load %arg10[%c1_156, %c0_157] : memref<3x128xf32, #tpu.memory_space<vmem>>, vector<1x128xf32>
    tpu.vector_store %arg10[%c1_156, %c0_157], %554 {strides = array<i32>} : memref<3x128xf32, #tpu.memory_space<vmem>>, vector<1x128xf32>,
    %cst_158 = arith.constant 0.000000e+00 : f32
    %556 = vector.broadcast %cst_158 : f32 to vector<1x127xf32>
    %557 = tpu.concatenate %505, %556 in 1 : vector<1x1xf32>, vector<1x127xf32> -> vector<1x128xf32>
    %c2_159 = arith.constant 2 : index
    %c0_160 = arith.constant 0 : index
    %558 = vector.load %arg10[%c2_159, %c0_160] : memref<3x128xf32, #tpu.memory_space<vmem>>, vector<1x128xf32>
    tpu.vector_store %arg10[%c2_159, %c0_160], %557 {strides = array<i32>} : memref<3x128xf32, #tpu.memory_space<vmem>>, vector<1x128xf32>,
    return
  }
}

</mosaic_0001>

<bundles_post_ra>
// kernel: ac_forward.1
= control target key start
LH: loop header
LB: loop body
LE: loop exit
PB: predicated region body
PF: predicated region fallthrough
CT: control target
= control target key end

     0   :  { %vm52_vm0 = vcmask 1044480   ;;  %v3080_v2 = vmov 0.0   ;;  %vm48_vm1 = vcmask 39936   ;;  %vm3081_vm2 = vmmov 0   ;;  %s3085_s24 = smov 127   ;;  %s3086_s25 = smov 126   ;;  %s3774_s3 = inlined_call_operand.vmem [shape: f32[5,520], index: 3, kind: input, shape index: {}]   ;;  %s3775_s1 = inlined_call_operand.vmem [shape: f32[8,5], index: 1, kind: input, shape index: {}]   ;;  %s3776_s2 = inlined_call_operand.vmem [shape: f32[8,8], index: 2, kind: input, shape index: {}]   ;;  %s3777_s4 = inlined_call_operand.vmem [shape: f32[128,264], index: 4, kind: input, shape index: {}]   ;;  %s3778_s0 = inlined_call_operand.<no memory space> [shape: s32[1], index: 0, kind: input, shape index: {}]   ;;  %s3779_s9 = inlined_call_operand.vmem [shape: f32[16,128], index: 9, kind: input, shape index: {}]   ;;  %s3780_s5 = inlined_call_operand.vmem [shape: f32[64,136], index: 5, kind: input, shape index: {}]   ;;  %s3781_s7 = inlined_call_operand.vmem [shape: f32[32,128], index: 7, kind: input, shape index: {}]   ;;  %s3782_s6 = inlined_call_operand.vmem [shape: f32[128,64], index: 6, kind: input, shape index: {}]   ;;  %s3783_s8 = inlined_call_operand.vmem [shape: f32[128,32], index: 8, kind: input, shape index: {}]   ;;  %s3784_s10 = inlined_call_operand.vmem [shape: f32[3,128], index: 10, kind: output, shape index: {}]  }
   0x1   :  { %v42_v0 = vld [vmem:[%s3774_s3 + $0x8] sm:$0x1f]  ;;  %v41_v1 = vld [vmem:[%s3774_s3] sm:$0x1f]  ;;  %132 = vmatprep.mubr.f32.mxu0 %v3080_v2  ;;  %203 = vmatprep.mubr.f32.mxu1 %v3080_v2  ;;  %v44_v5 = vld [vmem:[%s3774_s3 + $0x18] sm:$0x1f]  ;;  %v317_v19 = vlaneseq }
   0x2   :  { %v37_v3 = vld [vmem:[%s3775_s1] sm:$0xff]  ;;  %2689 = vmatprep.subr.msk.mxu0 %vm52_vm0, %v42_v0  ;;  %2692 = vmatprep.subr.msk.mxu1 %vm52_vm0, %v44_v5  ;;  %v43_v6 = vld [vmem:[%s3774_s3 + $0x10] sm:$0x1f]  ;;  %v3082_v7 = vmov 5   ;;  %v3083_v8 = vmov 4   ;;  %v3087_v13 = vmov 6  }
   0x3   :  { %v45_v4 = vld [vmem:[%s3774_s3 + $0x20] sm:$0x1f]  ;;  %2690 = vmatpush1.msk.msra.mxu0 %vm52_vm0, %v41_v1  ;;  %2693 = vmatpush1.msk.msra.mxu1 %vm52_vm0, %v43_v6  ;;  %s3084_s3 = smov 125   ;;  %v3088_v14 = vmov 7   ;;  %v3196_v21 = vshrl.u32 %v317_v19, 7  ;;  %vm326_vm5 = vcmask 64512  }
   0x4   :  { %2691 = vmatmul.mubr.msk.f32.vlgmr.msra.gmra.mxu0 %vm48_vm1, %v37_v3  ;;  %2808 = vmatprep.subr.mxu0 %v3080_v2  ;;  %v38_v24 = vld [vmem:[%s3776_s2] sm:$0xff]  ;;  %v3089_v30 = vmov -1e+30   ;;  %s848_s23 = sadd.s32 1, %s3778_s0  ;;  %s3090_s29 = smov 64   ;;  %vm1593_vm15 = vcmask 523264  }
   0x5   :  { %2809 = vmatpush3.msk.msra.mxu0 %vm52_vm0, %v45_v4  ;;  %2810 = vmatprep.mubr.msk.f32.mxu0 %vm3081_vm2, %v3080_v2  ;;  %v3199_v23 = vsub.s32 0, %v3196_v21  ;;  %vm39_vm3 = vcmp.gt.f32.partialorder %v38_v24, 0.0  ;;  %s2308_s15 = sadd.s32 3, %s3778_s0 }
   0x6   :  { %2818 = vmatprep.subr.mxu0 %v3080_v2  ;;  %2813 = vmatprep.subr.mxu1 %v3080_v2  ;;  %v3205_v31 = vsel %vm39_vm3, 0.0, %v3089_v30 }
   0x7   :  { %2694 = vmatmul.mubr.msk.f32.vlgmr.msra.gmra.mxu1 %vm48_vm1, %v37_v3  ;;  %3002 = vset.pattern.permute.xlu1 %v3082_v7 }
   0x8   :  { %2811 = vmatmul.mubr.msk.f32.vlgmr.msra.gmra.mxu0 %vm48_vm1, %v37_v3  ;;  %2815 = vmatprep.mubr.msk.f32.mxu1 %vm3081_vm2, %v3080_v2 }
   0x9   :  { %2820 = vmatprep.mubr.msk.f32.mxu0 %vm3081_vm2, %v3080_v2  ;;  %3003 = vset.pattern.permute.xlu0 %v3083_v8 }
  0xc4   :  { %v134_v9 = vpop.f32.mrf.mxu0 }
  0xc5   :  { %2819 = vmatpush3.msra.mxu0 %v134_v9 }
  0xc6   :  { %v136_v10 = vpop.f32.mrf.mxu0  ;;  %2828 = vmatprep.subr.mxu0 %v3080_v2 }
  0xc7   :  { %2814 = vmatpush3.msra.mxu1 %v136_v10 }
  0xc8   :  { %v276_v11 = vpop.f32.mrf.mxu0  ;;  %2823 = vmatprep.subr.mxu1 %v3080_v2 }
  0xc9   :  { %676 = vrot.lane.b32.xlu1 %v276_v11, %s3084_s3  ;;  %338 = vrot.lane.b32.xlu0 %v276_v11, %s3085_s24 }
  0xca   :  { %v2812_v12 = vpop.f32.mrf.mxu0 }
  0xcd   :  { %374 = vperm.xlu1 %3002, %v276_v11   ;;  %543 = vrot.lane.b32.xlu0 %v276_v11, %s3086_s25 }
  0xd1   :  { %3004 = vset.pattern.permute.xlu1 %v3087_v13  ;;  %314 = vperm.xlu0 %3003, %v276_v11  }
  0xd2   :  { %579 = vperm.xlu1 %3004, %v276_v11  }
  0xd6   :  { %3005 = vset.pattern.permute.xlu1 %v3088_v14 }
  0xd7   :  { %712 = vperm.xlu1 %3005, %v276_v11  }
 0x100   :  { %280 = vxpose.xlu1.b32.start.end [1/1] (short) (narrow) %v276_v11, 8 }
 0x11e   :  { %3006 = vset.pattern.permute.xlu1 %v3082_v7 }
 0x13b   :  { %v339_v15 = vpop.permute.xlu0 %338  ;;  %v677_v17 = vpop.permute.xlu1 %676 }
 0x13c   :  { %341 = vxpose.xlu0.b32.start.end [1/1] (short) (narrow) %v339_v15, 8 }
 0x13f   :  { %v544_v16 = vpop.permute.xlu0 %543 }
 0x140   :  { %546 = vxpose.xlu0.b32.start.end [1/1] (short) (narrow) %v544_v16, 8 }
 0x144   :  { %679 = vxpose.xlu0.b32.start.end [1/1] (short) (narrow) %v677_v17, 8 }
 0x148   :  { %v375_v18 = vpop.permute.xlu1 %374 }
 0x14c   :  { %v315_v27 = vpop.permute.xlu0 %314 }
 0x14d   :  { %v580_v20 = vpop.permute.xlu1 %579 }
 0x152   :  { %v713_v22 = vpop.permute.xlu1 %712 }
 0x17c   :  { %v296_v25 = vpop.trf.xlu1 }
 0x17d   :  { %v320_v26 = vrot.slane %v296_v25, %v3199_v23 }
 0x17f   :  { %v321_v28 = vadd.f32 %v320_v26, %v315_v27 }
 0x181   :  { %v323_v29 = vmul.f32 0.2, %v321_v28  ;;  %vm322_vm4 = vcmp.gt.f32.partialorder %v321_v28, 0.0 }
 0x183   :  { %v324_v32 = vsel %vm322_vm4, %v321_v28, %v323_v29 }
 0x184   :  { %v325_v33 = vadd.f32 %v324_v32, %v3205_v31 }
 0x186   :  { %v327_v34 = vsel %vm326_vm5, %v325_v33, -inf }
 0x187   :  { %328 = vmax.xlane.f32.xlu1 %v327_v34 }
 0x1b8   :  { %v357_v35 = vpop.trf.xlu0 }
 0x1b9   :  { %v380_v36 = vrot.slane %v357_v35, %v3199_v23  ;;  %v912_v35 = vld [vmem:[%s3777_s4 + $0x170] sm:$0xff] }
 0x1bb   :  { %v381_v37 = vadd.f32 %v380_v36, %v375_v18  ;;  %v205_v18 = vpop.f32.mrf.mxu1  ;;  %v911_v36 = vld [vmem:[%s3777_s4 + $0x168] sm:$0xff] }
 0x1bc   :  { %v562_v38 = vpop.trf.xlu0 }
 0x1bd   :  { %v383_v39 = vmul.f32 0.2, %v381_v37  ;;  %v585_v40 = vrot.slane %v562_v38, %v3199_v23  ;;  %vm382_vm6 = vcmp.gt.f32.partialorder %v381_v37, 0.0  ;;  %v207_v24 = vpop.f32.mrf.mxu1  ;;  %v909_v38 = vld [vmem:[%s3777_s4 + $0x158] sm:$0xff] }
 0x1bf   :  { %v586_v41 = vadd.f32 %v585_v40, %v580_v20  ;;  %v384_v42 = vsel %vm382_vm6, %v381_v37, %v383_v39  ;;  %v913_v37 = vld [vmem:[%s3777_s4 + $0x178] sm:$0xff]  ;;  %v908_v39 = vld [vmem:[%s3777_s4 + $0x150] sm:$0xff]  ;;  %v910_v40 = vld [vmem:[%s3777_s4 + $0x160] sm:$0xff] }
 0x1c0   :  { %v695_v43 = vpop.trf.xlu0  ;;  %v385_v44 = vadd.f32 %v384_v42, %v3205_v31  ;;  %v905_v42 = vld [vmem:[%s3777_s4 + $0x138] sm:$0xff] }
 0x1c1   :  { %v588_v45 = vmul.f32 0.2, %v586_v41  ;;  %v718_v46 = vrot.slane %v695_v43, %v3199_v23  ;;  %vm587_vm7 = vcmp.gt.f32.partialorder %v586_v41, 0.0  ;;  %v907_v43 = vld [vmem:[%s3777_s4 + $0x148] sm:$0xff] }
 0x1c2   :  { %v386_v47 = vsel %vm326_vm5, %v385_v44, -inf }
 0x1c3   :  { %v719_v48 = vadd.f32 %v718_v46, %v713_v22  ;;  %387 = vmax.xlane.f32.xlu0 %v386_v47  ;;  %v589_v49 = vsel %vm587_vm7, %v586_v41, %v588_v45  ;;  %v906_v41 = vld [vmem:[%s3777_s4 + $0x140] sm:$0xff]  ;;  %v904_v46 = vld [vmem:[%s3777_s4 + $0x130] sm:$0xff] }
 0x1c4   :  { %v590_v50 = vadd.f32 %v589_v49, %v3205_v31  ;;  %v902_v45 = vld [vmem:[%s3777_s4 + $0x120] sm:$0xff]  ;;  %v900_v47 = vld [vmem:[%s3777_s4 + $0x110] sm:$0xff]  ;;  %v901_v49 = vld [vmem:[%s3777_s4 + $0x118] sm:$0xff] }
 0x1c5   :  { %v721_v51 = vmul.f32 0.2, %v719_v48  ;;  %vm720_vm8 = vcmp.gt.f32.partialorder %v719_v48, 0.0 }
 0x1c6   :  { %v591_v52 = vsel %vm326_vm5, %v590_v50, -inf }
 0x1c7   :  { %592 = vmax.xlane.f32.xlu1 %v591_v52  ;;  %v722_v53 = vsel %vm720_vm8, %v719_v48, %v721_v51  ;;  %v899_v48 = vld [vmem:[%s3777_s4 + $0x108] sm:$0xff]  ;;  %v896_v51 = vld [vmem:[%s3777_s4 + $0xf0] sm:$0xff]  ;;  %v898_v52 = vld [vmem:[%s3777_s4 + $0x100] sm:$0xff]  ;;  %vm2276_vm8 = vcmask 261120  }
 0x1c8   :  { %v723_v54 = vadd.f32 %v722_v53, %v3205_v31  ;;  %v894_v53 = vld [vmem:[%s3777_s4 + $0xe0] sm:$0xff] }
 0x1ca   :  { %v724_v55 = vsel %vm326_vm5, %v723_v54, -inf }
 0x1cb   :  { %725 = vmax.xlane.f32.xlu0 %v724_v55  ;;  %v895_v55 = vld [vmem:[%s3777_s4 + $0xe8] sm:$0xff] }
 0x210   :  { %v329_v56 = vpop.xlane.xlu1 %328 }
 0x211   :  { %v330_v57 = vsub.f32 %v325_v33, %v329_v56  ;;  %v891_v56 = vld [vmem:[%s3777_s4 + $0xc8] sm:$0xff] }
 0x213   :  { %v331_v58 = vmul.f32 1.442695, %v330_v57  ;;  %v890_v57 = vld [vmem:[%s3777_s4 + $0xc0] sm:$0xff] }
 0x215   :  { %3014 = vpow2.f32 %v331_v58  ;;  %v892_v58 = vld [vmem:[%s3777_s4 + $0xd0] sm:$0xff] }
 0x222   :  { %v3015_v59 = vpop.eup %3014 }
 0x223   :  { %v333_v60 = vsel %vm326_vm5, %v3015_v59, 0.0 }
 0x224   :  { %334 = vadd.xlane.f32.xlu0 %v333_v60  ;;  %v888_v60 = vld [vmem:[%s3777_s4 + $0xb0] sm:$0xff] }
 0x24c   :  { %v388_v61 = vpop.xlane.xlu0 %387 }
 0x24d   :  { %v389_v62 = vsub.f32 %v385_v44, %v388_v61  ;;  %v903_v44 = vld [vmem:[%s3777_s4 + $0x128] sm:$0xff] }
 0x24e   :  { %v887_v61 = vld [vmem:[%s3777_s4 + $0xa8] sm:$0xff] }
 0x24f   :  { %v390_v63 = vmul.f32 1.442695, %v389_v62  ;;  %v889_v62 = vld [vmem:[%s3777_s4 + $0xb8] sm:$0xff] }
 0x250   :  { %v593_v0 = vpop.xlane.xlu1 %592 }
 0x251   :  { %3016 = vpow2.f32 %v390_v63  ;;  %v594_v1 = vsub.f32 %v590_v50, %v593_v0  ;;  %v897_v50 = vld [vmem:[%s3777_s4 + $0xf8] sm:$0xff] }
 0x252   :  { %v885_v63 = vld [vmem:[%s3777_s4 + $0x98] sm:$0xff] }
 0x253   :  { %v595_v3 = vmul.f32 1.442695, %v594_v1  ;;  %v884_v1 = vld [vmem:[%s3777_s4 + $0x90] sm:$0xff] }
 0x254   :  { %v726_v4 = vpop.xlane.xlu0 %725 }
 0x255   :  { %3018 = vpow2.f32 %v595_v3  ;;  %v727_v5 = vsub.f32 %v723_v54, %v726_v4  ;;  %v893_v54 = vld [vmem:[%s3777_s4 + $0xd8] sm:$0xff]  ;;  %v886_v3 = vld [vmem:[%s3777_s4 + $0xa0] sm:$0xff] }
 0x256   :  { %v882_v4 = vld [vmem:[%s3777_s4 + $0x80] sm:$0xff] }
 0x257   :  { %v728_v6 = vmul.f32 1.442695, %v727_v5  ;;  %v881_v5 = vld [vmem:[%s3777_s4 + $0x78] sm:$0xff] }
 0x259   :  { %3020 = vpow2.f32 %v728_v6  ;;  %v883_v6 = vld [vmem:[%s3777_s4 + $0x88] sm:$0xff] }
 0x25e   :  { %v3017_v9 = vpop.eup %3016 }
 0x25f   :  { %v392_v10 = vsel %vm326_vm5, %v3017_v9, 0.0 }
 0x260   :  { %393 = vadd.xlane.f32.xlu1 %v392_v10  ;;  %v878_v10 = vld [vmem:[%s3777_s4 + $0x60] sm:$0xff] }
 0x262   :  { %v3019_v11 = vpop.eup %3018 }
 0x263   :  { %v597_v12 = vsel %vm326_vm5, %v3019_v11, 0.0 }
 0x264   :  { %598 = vadd.xlane.f32.xlu1 %v597_v12  ;;  %v876_v12 = vld [vmem:[%s3777_s4 + $0x50] sm:$0xff] }
 0x266   :  { %v3021_v15 = vpop.eup %3020 }
 0x267   :  { %v730_v16 = vsel %vm326_vm5, %v3021_v15, 0.0 }
 0x268   :  { %731 = vadd.xlane.f32.xlu0 %v730_v16  ;;  %v877_v16 = vld [vmem:[%s3777_s4 + $0x58] sm:$0xff] }
 0x2ad   :  { %v335_v17 = vpop.xlane.xlu0 %334 }
 0x2ae   :  { %3022 = vrcp.f32 %v335_v17  ;;  %v873_v17 = vld [vmem:[%s3777_s4 + $0x38] sm:$0xff] }
 0x2bb   :  { %v3023_v20 = vpop.eup %3022 }
 0x2bc   :  { %v337_v22 = vmul.f32 %v3023_v20, %v3015_v59  ;;  %v874_v20 = vld [vmem:[%s3777_s4 + $0x40] sm:$0xff] }
 0x2be   :  { %2821 = vmatmul.mubr.msk.f32.vlgmr.msra.gmra.mxu0 %vm326_vm5, %v337_v22  ;;  %v870_v22 = vld [vmem:[%s3777_s4 + $0x20] sm:$0xff] }
 0x2bf   :  { %2829 = vmatpush3.msra.mxu0 %v207_v24  ;;  %2830 = vmatprep.mubr.msk.f32.mxu0 %vm3081_vm2, %v3080_v2  ;;  %v869_v24 = vld [vmem:[%s3777_s4 + $0x18] sm:$0xff] }
 0x2c0   :  { %2833 = vmatprep.subr.mxu0 %v3080_v2 }
 0x2e9   :  { %v394_v25 = vpop.xlane.xlu1 %393 }
 0x2ea   :  { %3024 = vrcp.f32 %v394_v25  ;;  %v871_v25 = vld [vmem:[%s3777_s4 + $0x28] sm:$0xff] }
 0x2ed   :  { %v599_v26 = vpop.xlane.xlu1 %598 }
 0x2ee   :  { %3026 = vrcp.f32 %v599_v26  ;;  %v867_v26 = vld [vmem:[%s3777_s4 + $0x8] sm:$0xff] }
 0x2f1   :  { %v732_v27 = vpop.xlane.xlu0 %731 }
 0x2f2   :  { %3028 = vrcp.f32 %v732_v27  ;;  %v866_v27 = vld [vmem:[%s3777_s4] sm:$0xff] }
 0x2f7   :  { %v3025_v28 = vpop.eup %3024 }
 0x2f8   :  { %v396_v29 = vmul.f32 %v3025_v28, %v3017_v9  ;;  %v879_v9 = vld [vmem:[%s3777_s4 + $0x68] sm:$0xff]  ;;  %v868_v28 = vld [vmem:[%s3777_s4 + $0x10] sm:$0xff] }
 0x2fa   :  { %2816 = vmatmul.mubr.msk.f32.vlgmr.msra.gmra.mxu1 %vm326_vm5, %v396_v29 }
 0x2fb   :  { %v3027_v30 = vpop.eup %3026  ;;  %2824 = vmatpush3.msra.mxu1 %v205_v18  ;;  %2825 = vmatprep.mubr.msk.f32.mxu1 %vm3081_vm2, %v3080_v2  ;;  %v872_v18 = vld [vmem:[%s3777_s4 + $0x30] sm:$0xff] }
 0x2fc   :  { %v601_v32 = vmul.f32 %v3027_v30, %v3019_v11  ;;  %916 = vmatprep.subr.mxu1 %v912_v35  ;;  %v880_v11 = vld [vmem:[%s3777_s4 + $0x70] sm:$0xff] }
 0x2fe   :  { %2826 = vmatmul.mubr.msk.f32.vlgmr.msra.gmra.mxu1 %vm326_vm5, %v601_v32 }
 0x2ff   :  { %v3029_v33 = vpop.eup %3028  ;;  %980 = vmatprep.mubr.f32.mxu1 %v3080_v2  ;;  %917 = vmatpush1.msra.mxu1 %v911_v36 }
 0x300   :  { %v734_v34 = vmul.f32 %v3029_v33, %v3021_v15  ;;  %918 = vmatprep.subr.mxu1 %v909_v38  ;;  %v875_v15 = vld [vmem:[%s3777_s4 + $0x48] sm:$0xff]  ;;  %s1630_s4 = sadd.s32 2, %s3778_s0 }
 0x301   :  { %919 = vmatpush1.msra.mxu1 %v908_v39 }
 0x302   :  { %2831 = vmatmul.mubr.msk.f32.vlgmr.msra.gmra.mxu0 %vm326_vm5, %v734_v34  ;;  %920 = vmatprep.subr.mxu1 %v906_v41 }
 0x303   :  { %2865 = vmatprep.mubr.msk.f32.mxu0 %vm3081_vm2, %v3080_v2  ;;  %2834 = vmatpush3.msra.mxu0 %v913_v37 }
 0x304   :  { %2835 = vmatprep.subr.mxu0 %v3080_v2  ;;  %921 = vmatpush1.msra.mxu1 %v905_v42 }
 0x305   :  { %2836 = vmatpush3.msra.mxu0 %v910_v40  ;;  %922 = vmatprep.subr.mxu1 %v903_v44 }
 0x306   :  { %2837 = vmatprep.subr.mxu0 %v3080_v2  ;;  %923 = vmatpush1.msra.mxu1 %v902_v45 }
 0x307   :  { %2838 = vmatpush3.msra.mxu0 %v907_v43  ;;  %924 = vmatprep.subr.mxu1 %v900_v47 }
 0x308   :  { %2839 = vmatprep.subr.mxu0 %v3080_v2  ;;  %925 = vmatpush1.msra.mxu1 %v899_v48 }
 0x309   :  { %2840 = vmatpush3.msra.mxu0 %v904_v46  ;;  %926 = vmatprep.subr.mxu1 %v897_v50 }
 0x30a   :  { %2841 = vmatprep.subr.mxu0 %v3080_v2  ;;  %927 = vmatpush1.msra.mxu1 %v896_v51 }
 0x30b   :  { %2842 = vmatpush3.msra.mxu0 %v901_v49  ;;  %928 = vmatprep.subr.mxu1 %v894_v53  ;;  %v3403_v53 = vmul.u32 1664525, %v3196_v21 }
 0x30c   :  { %2843 = vmatprep.subr.mxu0 %v3080_v2  ;;  %929 = vmatpush1.msra.mxu1 %v893_v54  ;;  %v850_v54 = vstv %s848_s23 }
 0x30d   :  { %2844 = vmatpush3.msra.mxu0 %v898_v52  ;;  %930 = vmatprep.subr.mxu1 %v891_v56  ;;  %v847_v52 = vand.u32 127, %v317_v19  ;;  %v2701_v19 = vld [vmem:[%s3779_s9] ss:$0 sm:$0xff] }
 0x30e   :  { %2845 = vmatprep.subr.mxu0 %v3080_v2  ;;  %931 = vmatpush1.msra.mxu1 %v890_v57  ;;  %v851_v57 = vadd.s32 %v850_v54, %v3403_v53 }
 0x30f   :  { %2846 = vmatpush3.msra.mxu0 %v895_v55  ;;  %932 = vmatprep.subr.mxu1 %v888_v60 }
 0x310   :  { %2847 = vmatprep.subr.mxu0 %v3080_v2  ;;  %933 = vmatpush1.msra.mxu1 %v887_v61 }
 0x311   :  { %2848 = vmatpush3.msra.mxu0 %v892_v58  ;;  %934 = vmatprep.subr.mxu1 %v885_v63  ;;  %v3406_v58 = vmul.u32 1013904223, %v847_v52 }
 0x312   :  { %2849 = vmatprep.subr.mxu0 %v3080_v2  ;;  %935 = vmatpush1.msra.mxu1 %v884_v1 }
 0x313   :  { %2850 = vmatpush3.msra.mxu0 %v889_v62  ;;  %936 = vmatprep.subr.mxu1 %v882_v4  ;;  %v853_v61 = vadd.s32 %v3406_v58, %v851_v57  ;;  %v2702_v4 = vld [vmem:[%s3779_s9 + $0x1] ss:$0 sm:$0xff] }
 0x314   :  { %2851 = vmatprep.subr.mxu0 %v3080_v2  ;;  %937 = vmatpush1.msra.mxu1 %v881_v5 }
 0x315   :  { %2852 = vmatpush3.msra.mxu0 %v886_v3  ;;  %938 = vmatprep.subr.mxu1 %v879_v9  ;;  %v854_v62 = vshra.s32 %v853_v61, 13 }
 0x316   :  { %2853 = vmatprep.subr.mxu0 %v3080_v2  ;;  %939 = vmatpush1.msra.mxu1 %v878_v10 }
 0x317   :  { %2854 = vmatpush3.msra.mxu0 %v883_v6  ;;  %940 = vmatprep.subr.mxu1 %v876_v12  ;;  %v855_v63 = vxor.u32 %v854_v62, %v853_v61 }
 0x318   :  { %2855 = vmatprep.subr.mxu0 %v3080_v2  ;;  %941 = vmatpush1.msra.mxu1 %v875_v15 }
 0x319   :  { %2856 = vmatpush3.msra.mxu0 %v880_v11  ;;  %942 = vmatprep.subr.mxu1 %v873_v17 }
 0x31a   :  { %2857 = vmatprep.subr.mxu0 %v3080_v2  ;;  %943 = vmatpush1.msra.mxu1 %v872_v18 }
 0x31b   :  { %2858 = vmatpush3.msra.mxu0 %v877_v16  ;;  %944 = vmatprep.subr.mxu1 %v870_v22 }
 0x31c   :  { %2859 = vmatprep.subr.mxu0 %v3080_v2  ;;  %945 = vmatpush1.msra.mxu1 %v869_v24 }
 0x31d   :  { %2860 = vmatpush3.msra.mxu0 %v874_v20  ;;  %946 = vmatprep.subr.mxu1 %v867_v26 }
 0x31e   :  { %2861 = vmatprep.subr.mxu0 %v3080_v2  ;;  %947 = vmatpush1.msra.mxu1 %v866_v27 }
 0x31f   :  { %2862 = vmatpush3.msra.mxu0 %v871_v25  ;;  %2868 = vmatprep.subr.mxu1 %v3080_v2 }
 0x320   :  { %2863 = vmatprep.subr.mxu0 %v3080_v2 }
 0x321   :  { %2864 = vmatpush3.msra.mxu0 %v868_v28 }
 0x322   :  { %2873 = vmatprep.subr.mxu0 %v3080_v2 }
 0x37e   :  { %v3312_v59 = vpop.f32.mrf.mxu0 }
 0x380   :  { %v2822_v0 = vpop.f32.mrf.mxu0 }
 0x381   :  { %v856_v0 = vmul.u32 656542357, %v855_v63 }
 0x383   :  { %v857_v3 = vshra.s32 %v856_v0, 17 }
 0x385   :  { %v858_v9 = vxor.u32 %v857_v3, %v856_v0 }
 0x387   :  { %v859_v11 = vmul.u32 16777619, %v858_v9 }
 0x389   :  { %v860_v12 = vshra.s32 %v859_v11, 5 }
 0x38b   :  { %v861_v15 = vxor.u32 %v860_v12, %v859_v11 }
 0x38d   :  { %v862_v16 = vand.u32 2147483647, %v861_v15 }
 0x38f   :  { %vm863_vm10 = vcmp.lt.s32.totalorder %v862_v16, 1073741824 }
 0x3ba   :  { %v466_v29 = vpop.f32.mrf.mxu1 }
 0x3bb   :  { %v540_v33 = vadd.f32 %v3312_v59, %v466_v29 }
 0x3bc   :  { %v2817_v30 = vpop.f32.mrf.mxu1 }
 0x3be   :  { %v671_v32 = vpop.f32.mrf.mxu1 }
 0x3bf   :  { %v675_v35 = vadd.f32 %v671_v32, %v540_v33 }
 0x3c0   :  { %v2827_v34 = vpop.f32.mrf.mxu1 }
 0x3c2   :  { %v804_v36 = vpop.f32.mrf.mxu0 }
 0x3c3   :  { %v808_v37 = vadd.f32 %v804_v36, %v675_v35 }
 0x3c4   :  { %v2832_v38 = vpop.f32.mrf.mxu0 }
 0x3c5   :  { %v809_v39 = vrot.slane %v808_v37, 4 }
 0x3c7   :  { %v810_v40 = vadd.f32 %v809_v39, %v808_v37 }
 0x3c9   :  { %v811_v41 = vrot.slane %v810_v40, 2 }
 0x3cb   :  { %v812_v42 = vadd.f32 %v811_v41, %v810_v40 }
 0x3cd   :  { %v813_v43 = vrot.slane %v812_v42, 1 }
 0x3cf   :  { %v814_v44 = vadd.f32 %v813_v43, %v812_v42 }
 0x3d1   :  { %v816_v45 = vmul.f32 0.125, %v814_v44 }
 0x3d3   :  { %v817_v46 = vsub.f32 %v808_v37, %v816_v45 }
 0x3d5   :  { %v818_v47 = vmul.f32 %v817_v46, %v817_v46 }
 0x3d7   :  { %v819_v48 = vrot.slane %v818_v47, 4 }
 0x3d9   :  { %v820_v49 = vadd.f32 %v819_v48, %v818_v47 }
 0x3db   :  { %v821_v50 = vrot.slane %v820_v49, 2 }
 0x3dd   :  { %v822_v51 = vadd.f32 %v821_v50, %v820_v49 }
 0x3df   :  { %v823_v55 = vrot.slane %v822_v51, 1 }
 0x3e1   :  { %v824_v56 = vadd.f32 %v823_v55, %v822_v51 }
 0x3e3   :  { %v825_v59 = vmul.f32 0.125, %v824_v56 }
 0x3e5   :  { %v826_v60 = vadd.f32 0.00016, %v825_v59 }
 0x3e7   :  { %3030 = vrsqrt.f32 %v826_v60 }
 0x3f4   :  { %v3031_v1 = vpop.eup %3030 }
 0x3f5   :  { %v828_v21 = vmul.f32 %v3031_v1, %v817_v46 }
 0x3f7   :  { %v833_v5 = vmul.f32 %v2701_v19, %v828_v21 }
 0x3f9   :  { %v838_v6 = vadd.f32 %v2702_v4, %v833_v5 }
 0x3fb   :  { %v840_v10 = vmul.f32 1.442695, %v838_v6  ;;  %vm839_vm9 = vcmp.gt.f32.partialorder %v838_v6, 0.0 }
 0x3fd   :  { %3032 = vpow2.f32 %v840_v10 }
 0x40a   :  { %v3033_v17 = vpop.eup %3032 }
 0x40b   :  { %v2703_v18 = vadd.f32 -1.0, %v3033_v17 }
 0x40d   :  { %v843_v20 = vsel %vm839_vm9, %v838_v6, %v2703_v18 }
 0x40e   :  { %v864_v22 = vmul.f32 2.0, %v843_v20 }
 0x410   :  { %2704 = vmatmul.mubr.msk.f32.vlgmr.msra.gmra.mxu1 %vm863_vm10, %v864_v22  ;;  %2866 = vmatmul.mubr.msk.f32.vlgmr.msra.gmra.mxu0 %vm863_vm10, %v864_v22  ;;  %vm2682_vm10 = vcmask 7168  }
 0x411   :  { %2875 = vmatprep.mubr.msk.f32.mxu0 %vm3081_vm2, %v3080_v2  ;;  %2870 = vmatprep.mubr.msk.f32.mxu1 %vm3081_vm2, %v3080_v2 }
 0x4d0   :  { %v3419_v24 = vpop.f32.mrf.mxu1  ;;  %v1053_v25 = vpop.f32.mrf.mxu0 }
 0x4d1   :  { %1323 = vrot.lane.b32.xlu0 %v1053_v25, %s3086_s25  ;;  %1114 = vrot.lane.b32.xlu1 %v1053_v25, %s3085_s24 }
 0x4d2   :  { %2874 = vmatpush3.msra.mxu0 %v3419_v24  ;;  %v2867_v26 = vpop.f32.mrf.mxu0 }
 0x4d3   :  { %2883 = vmatprep.subr.mxu0 %v3080_v2  ;;  %v984_v26 = vpop.f32.mrf.mxu1 }
 0x4d5   :  { %1091 = vperm.xlu0 %3003, %v1053_v25   ;;  %1456 = vrot.lane.b32.xlu1 %v1053_v25, %s3084_s3 }
 0x4d9   :  { %3008 = vset.pattern.permute.xlu0 %v3088_v14  ;;  %1150 = vperm.xlu1 %3006, %v1053_v25  }
 0x4da   :  { %1492 = vperm.xlu0 %3008, %v1053_v25  }
 0x4dd   :  { %3007 = vset.pattern.permute.xlu1 %v3087_v13 }
 0x4de   :  { %1359 = vperm.xlu1 %3007, %v1053_v25  }
 0x4f8   :  { %1057 = vxpose.xlu0.b32.start.end [1/1] (short) (narrow) %v1053_v25, 8 }
 0x543   :  { %v1324_v27 = vpop.permute.xlu0 %1323  ;;  %v1115_v28 = vpop.permute.xlu1 %1114 }
 0x544   :  { %1326 = vxpose.xlu0.b32.start.end [1/1] (short) (narrow) %v1324_v27, 8  ;;  %1117 = vxpose.xlu1.b32.start.end [1/1] (short) (narrow) %v1115_v28, 8 }
 0x547   :  { %v1457_v29 = vpop.permute.xlu1 %1456 }
 0x548   :  { %1459 = vxpose.xlu1.b32.start.end [1/1] (short) (narrow) %v1457_v29, 8 }
 0x550   :  { %v1092_v30 = vpop.permute.xlu0 %1091 }
 0x554   :  { %v1151_v40 = vpop.permute.xlu1 %1150 }
 0x555   :  { %v1493_v32 = vpop.permute.xlu0 %1492 }
 0x559   :  { %v1360_v41 = vpop.permute.xlu1 %1359 }
 0x566   :  { %3009 = vset.pattern.permute.xlu1 %v3082_v7 }
 0x56d   :  { %3010 = vset.pattern.permute.xlu0 %v3083_v8 }
 0x574   :  { %v1073_v33 = vpop.trf.xlu0 }
 0x575   :  { %v1097_v34 = vrot.slane %v1073_v33, %v3199_v23 }
 0x577   :  { %v1098_v35 = vadd.f32 %v1097_v34, %v1092_v30 }
 0x579   :  { %v1100_v36 = vmul.f32 0.2, %v1098_v35  ;;  %vm1099_vm11 = vcmp.gt.f32.partialorder %v1098_v35, 0.0 }
 0x57b   :  { %v1101_v37 = vsel %vm1099_vm11, %v1098_v35, %v1100_v36 }
 0x57c   :  { %v1102_v38 = vadd.f32 %v1101_v37, %v3205_v31 }
 0x57e   :  { %v1103_v39 = vsel %vm326_vm5, %v1102_v38, -inf }
 0x57f   :  { %1104 = vmax.xlane.f32.xlu1 %v1103_v39 }
 0x5c0   :  { %v1342_v42 = vpop.trf.xlu0  ;;  %v1133_v7 = vpop.trf.xlu1 }
 0x5c1   :  { %v1365_v43 = vrot.slane %v1342_v42, %v3199_v23  ;;  %v1156_v8 = vrot.slane %v1133_v7, %v3199_v23  ;;  %v1661_v7 = vld [vmem:[%s3780_s5 + $0x78] sm:$0xff] }
 0x5c3   :  { %v1366_v44 = vadd.f32 %v1365_v43, %v1360_v41  ;;  %v1157_v45 = vadd.f32 %v1156_v8, %v1151_v40  ;;  %v1660_v43 = vld [vmem:[%s3780_s5 + $0x70] sm:$0xff]  ;;  %v1659_v8 = vld [vmem:[%s3780_s5 + $0x68] sm:$0xff] }
 0x5c4   :  { %v1475_v46 = vpop.trf.xlu1 }
 0x5c5   :  { %v1368_v47 = vmul.f32 0.2, %v1366_v44  ;;  %v1159_v48 = vmul.f32 0.2, %v1157_v45  ;;  %v1498_v49 = vrot.slane %v1475_v46, %v3199_v23  ;;  %vm1367_vm12 = vcmp.gt.f32.partialorder %v1366_v44, 0.0  ;;  %v1656_v46 = vld [vmem:[%s3780_s5 + $0x50] sm:$0xff] }
 0x5c6   :  { %vm1158_vm13 = vcmp.gt.f32.partialorder %v1157_v45, 0.0 }
 0x5c7   :  { %v1499_v50 = vadd.f32 %v1498_v49, %v1493_v32  ;;  %v1369_v51 = vsel %vm1367_vm12, %v1366_v44, %v1368_v47  ;;  %v1160_v52 = vsel %vm1158_vm13, %v1157_v45, %v1159_v48  ;;  %v1658_v44 = vld [vmem:[%s3780_s5 + $0x60] sm:$0xff]  ;;  %v1657_v45 = vld [vmem:[%s3780_s5 + $0x58] sm:$0xff]  ;;  %v1655_v47 = vld [vmem:[%s3780_s5 + $0x48] sm:$0xff]  ;;  %vm2663_vm12 = vcmask 57344  }
 0x5c8   :  { %v1370_v54 = vadd.f32 %v1369_v51, %v3205_v31  ;;  %v1161_v55 = vadd.f32 %v1160_v52, %v3205_v31  ;;  %v1654_v48 = vld [vmem:[%s3780_s5 + $0x40] sm:$0xff]  ;;  %v1653_v49 = vld [vmem:[%s3780_s5 + $0x38] sm:$0xff]  ;;  %v1651_v51 = vld [vmem:[%s3780_s5 + $0x28] sm:$0xff] }
 0x5c9   :  { %v1501_v56 = vmul.f32 0.2, %v1499_v50  ;;  %vm1500_vm14 = vcmp.gt.f32.partialorder %v1499_v50, 0.0  ;;  %v1650_v52 = vld [vmem:[%s3780_s5 + $0x20] sm:$0xff] }
 0x5ca   :  { %v1371_v57 = vsel %vm326_vm5, %v1370_v54, -inf  ;;  %v1162_v59 = vsel %vm326_vm5, %v1161_v55, -inf }
 0x5cb   :  { %1372 = vmax.xlane.f32.xlu1 %v1371_v57  ;;  %1163 = vmax.xlane.f32.xlu0 %v1162_v59  ;;  %v1502_v60 = vsel %vm1500_vm14, %v1499_v50, %v1501_v56  ;;  %v1652_v50 = vld [vmem:[%s3780_s5 + $0x30] sm:$0xff]  ;;  %v1647_v56 = vld [vmem:[%s3780_s5 + $0x8] sm:$0xff]  ;;  %v1646_v57 = vld [vmem:[%s3780_s5] sm:$0xff] }
 0x5cc   :  { %v1503_v61 = vadd.f32 %v1502_v60, %v3205_v31 }
 0x5ce   :  { %v1504_v62 = vsel %vm326_vm5, %v1503_v61, -inf }
 0x5cf   :  { %1505 = vmax.xlane.f32.xlu0 %v1504_v62 }
 0x608   :  { %v1105_v63 = vpop.xlane.xlu1 %1104 }
 0x609   :  { %v1106_v0 = vsub.f32 %v1102_v38, %v1105_v63 }
 0x60b   :  { %v1107_v1 = vmul.f32 1.442695, %v1106_v0 }
 0x60d   :  { %3034 = vpow2.f32 %v1107_v1 }
 0x61a   :  { %v3035_v19 = vpop.eup %3034 }
 0x61b   :  { %v1109_v21 = vsel %vm326_vm5, %v3035_v19, 0.0 }
 0x61c   :  { %1110 = vadd.xlane.f32.xlu0 %v1109_v21 }
 0x654   :  { %v1164_v3 = vpop.xlane.xlu0 %1163  ;;  %v1373_v4 = vpop.xlane.xlu1 %1372 }
 0x655   :  { %v1165_v5 = vsub.f32 %v1161_v55, %v1164_v3  ;;  %v1374_v6 = vsub.f32 %v1370_v54, %v1373_v4  ;;  %v1649_v54 = vld [vmem:[%s3780_s5 + $0x18] sm:$0xff]  ;;  %v1648_v55 = vld [vmem:[%s3780_s5 + $0x10] sm:$0xff] }
 0x657   :  { %v1166_v9 = vmul.f32 1.442695, %v1165_v5  ;;  %v1375_v10 = vmul.f32 1.442695, %v1374_v6 }
 0x658   :  { %v1506_v11 = vpop.xlane.xlu0 %1505 }
 0x659   :  { %3036 = vpow2.f32 %v1166_v9  ;;  %v1507_v12 = vsub.f32 %v1503_v61, %v1506_v11 }
 0x65a   :  { %3038 = vpow2.f32 %v1375_v10 }
 0x65b   :  { %v1508_v15 = vmul.f32 1.442695, %v1507_v12 }
 0x65d   :  { %3040 = vpow2.f32 %v1508_v15 }
 0x666   :  { %v3037_v16 = vpop.eup %3036 }
 0x667   :  { %v1168_v17 = vsel %vm326_vm5, %v3037_v16, 0.0  ;;  %v3039_v18 = vpop.eup %3038 }
 0x668   :  { %1169 = vadd.xlane.f32.xlu1 %v1168_v17  ;;  %v1377_v25 = vsel %vm326_vm5, %v3039_v18, 0.0 }
 0x66a   :  { %v3041_v20 = vpop.eup %3040 }
 0x66b   :  { %v1510_v22 = vsel %vm326_vm5, %v3041_v20, 0.0 }
 0x66c   :  { %1511 = vadd.xlane.f32.xlu0 %v1510_v22  ;;  %1378 = vadd.xlane.f32.xlu1 %v1377_v25 }
 0x67d   :  { %1174 = vrot.lane.b32.xlu1 %v3419_v24, %s3090_s29 }
 0x682   :  { %1516 = vrot.lane.b32.xlu0 %v984_v26, %s3090_s29 }
 0x6a5   :  { %v1111_v27 = vpop.xlane.xlu0 %1110 }
 0x6a6   :  { %3042 = vrcp.f32 %v1111_v27 }
 0x6b3   :  { %v3043_v28 = vpop.eup %3042 }
 0x6b4   :  { %v1113_v29 = vmul.f32 %v3043_v28, %v3035_v19 }
 0x6b6   :  { %2876 = vmatmul.mubr.msk.f32.vlgmr.msra.gmra.mxu0 %vm326_vm5, %v1113_v29 }
 0x6b7   :  { %2885 = vmatprep.mubr.msk.f32.mxu0 %vm3081_vm2, %v3080_v2 }
 0x6f1   :  { %v1170_v30 = vpop.xlane.xlu1 %1169 }
 0x6f2   :  { %3044 = vrcp.f32 %v1170_v30 }
 0x6f5   :  { %v1512_v32 = vpop.xlane.xlu0 %1511  ;;  %v1379_v33 = vpop.xlane.xlu1 %1378 }
 0x6f6   :  { %3046 = vrcp.f32 %v1512_v32 }
 0x6f7   :  { %3048 = vrcp.f32 %v1379_v33 }
 0x6f9   :  { %v1175_v34 = vpop.permute.xlu1 %1174  ;;  %v1517_v24 = vpop.permute.xlu0 %1516 }
 0x6fa   :  { %2869 = vmatpush3.msra.mxu1 %v1175_v34  ;;  %2884 = vmatpush3.msra.mxu0 %v1517_v24 }
 0x6fb   :  { %2878 = vmatprep.subr.mxu1 %v3080_v2  ;;  %2888 = vmatprep.subr.mxu0 %v3080_v2 }
 0x6ff   :  { %v3045_v35 = vpop.eup %3044 }
 0x700   :  { %v1172_v36 = vmul.f32 %v3045_v35, %v3037_v16 }
 0x702   :  { %2871 = vmatmul.mubr.msk.f32.vlgmr.msra.gmra.mxu1 %vm326_vm5, %v1172_v36 }
 0x703   :  { %v3047_v37 = vpop.eup %3046  ;;  %2879 = vmatpush3.msra.mxu1 %v984_v26  ;;  %2880 = vmatprep.mubr.msk.f32.mxu1 %vm3081_vm2, %v3080_v2  ;;  %v1631_v26 = vstv %s1630_s4 }
 0x704   :  { %v3049_v38 = vpop.eup %3048  ;;  %v1514_v39 = vmul.f32 %v3047_v37, %v3041_v20  ;;  %1683 = vmatprep.subr.mxu1 %v1661_v7  ;;  %v1632_v29 = vadd.s32 %v1631_v26, %v3403_v53  ;;  %v2710_v37 = vld [vmem:[%s3779_s9 + $0x2] ss:$0 sm:$0xff] }
 0x705   :  { %v1381_v40 = vmul.f32 %v3049_v38, %v3039_v18 }
 0x706   :  { %2886 = vmatmul.mubr.msk.f32.vlgmr.msra.gmra.mxu0 %vm326_vm5, %v1514_v39  ;;  %v1633_v33 = vadd.s32 %v1632_v29, %v3406_v58 }
 0x707   :  { %2881 = vmatmul.mubr.msk.f32.vlgmr.msra.gmra.mxu1 %vm326_vm5, %v1381_v40  ;;  %2890 = vmatprep.mubr.msk.f32.mxu0 %vm3081_vm2, %v3080_v2  ;;  %v2711_v40 = vld [vmem:[%s3779_s9 + $0x3] ss:$0 sm:$0xff] }
 0x708   :  { %1731 = vmatprep.mubr.f32.mxu1 %v3080_v2  ;;  %1684 = vmatpush1.msra.mxu1 %v1660_v43  ;;  %v1634_v34 = vshra.s32 %v1633_v33, 13 }
 0x709   :  { %1685 = vmatprep.subr.mxu1 %v1659_v8 }
 0x70a   :  { %1686 = vmatpush1.msra.mxu1 %v1658_v44  ;;  %v1635_v24 = vxor.u32 %v1634_v34, %v1633_v33 }
 0x70b   :  { %1687 = vmatprep.subr.mxu1 %v1657_v45 }
 0x70c   :  { %1688 = vmatpush1.msra.mxu1 %v1656_v46  ;;  %v1636_v35 = vmul.u32 656542357, %v1635_v24 }
 0x70d   :  { %1689 = vmatprep.subr.mxu1 %v1655_v47 }
 0x70e   :  { %1690 = vmatpush1.msra.mxu1 %v1654_v48  ;;  %v1637_v39 = vshra.s32 %v1636_v35, 17 }
 0x70f   :  { %1691 = vmatprep.subr.mxu1 %v1653_v49 }
 0x710   :  { %1692 = vmatpush1.msra.mxu1 %v1652_v50  ;;  %v1638_v7 = vxor.u32 %v1637_v39, %v1636_v35 }
 0x711   :  { %1693 = vmatprep.subr.mxu1 %v1651_v51 }
 0x712   :  { %1694 = vmatpush1.msra.mxu1 %v1650_v52  ;;  %v1639_v8 = vmul.u32 16777619, %v1638_v7 }
 0x713   :  { %1695 = vmatprep.subr.mxu1 %v1649_v54 }
 0x714   :  { %1696 = vmatpush1.msra.mxu1 %v1648_v55  ;;  %v1640_v44 = vshra.s32 %v1639_v8, 5 }
 0x715   :  { %1697 = vmatprep.subr.mxu1 %v1647_v56 }
 0x716   :  { %1698 = vmatpush1.msra.mxu1 %v1646_v57  ;;  %v1641_v45 = vxor.u32 %v1640_v44, %v1639_v8 }
 0x717   :  { %2908 = vmatprep.subr.mxu1 %v3080_v2 }
 0x718   :  { %v1642_v46 = vand.u32 2147483647, %v1641_v45 }
 0x71a   :  { %vm1643_vm1 = vcmp.lt.s32.totalorder %v1642_v46, 1073741824 }
 0x776   :  { %v1319_v41 = vpop.f32.mrf.mxu0 }
 0x778   :  { %v2877_v42 = vpop.f32.mrf.mxu0 }
 0x7c2   :  { %v1246_v59 = vpop.f32.mrf.mxu1 }
 0x7c3   :  { %v1320_v61 = vadd.f32 %v1319_v41, %v1246_v59 }
 0x7c4   :  { %v2872_v60 = vpop.f32.mrf.mxu1 }
 0x7c6   :  { %v1588_v62 = vpop.f32.mrf.mxu0 }
 0x7c7   :  { %v1451_v63 = vpop.f32.mrf.mxu1 }
 0x7c8   :  { %v1455_v0 = vadd.f32 %v1451_v63, %v1320_v61  ;;  %v2887_v1 = vpop.f32.mrf.mxu0 }
 0x7c9   :  { %v2882_v19 = vpop.f32.mrf.mxu1 }
 0x7ca   :  { %v1592_v21 = vadd.f32 %v1588_v62, %v1455_v0 }
 0x7cc   :  { %v1594_v3 = vsel %vm1593_vm15, %v1592_v21, 0.0 }
 0x7cd   :  { %v1595_v4 = vrot.slane %v1594_v3, 4 }
 0x7cf   :  { %v1596_v5 = vadd.f32 %v1595_v4, %v1594_v3 }
 0x7d1   :  { %v1597_v6 = vrot.slane %v1596_v5, 2 }
 0x7d3   :  { %v1598_v9 = vadd.f32 %v1597_v6, %v1596_v5 }
 0x7d5   :  { %v1599_v10 = vrot.slane %v1598_v9, 1 }
 0x7d7   :  { %v1600_v11 = vadd.f32 %v1599_v10, %v1598_v9 }
 0x7d9   :  { %v1601_v12 = vmul.f32 0.125, %v1600_v11 }
 0x7db   :  { %v1602_v15 = vsub.f32 %v1592_v21, %v1601_v12 }
 0x7dd   :  { %v1603_v16 = vmul.f32 %v1602_v15, %v1602_v15 }
 0x7df   :  { %v1604_v17 = vsel %vm1593_vm15, %v1603_v16, 0.0 }
 0x7e0   :  { %v1605_v18 = vrot.slane %v1604_v17, 4 }
 0x7e2   :  { %v1606_v20 = vadd.f32 %v1605_v18, %v1604_v17 }
 0x7e4   :  { %v1607_v22 = vrot.slane %v1606_v20, 2 }
 0x7e6   :  { %v1608_v25 = vadd.f32 %v1607_v22, %v1606_v20 }
 0x7e8   :  { %v1609_v27 = vrot.slane %v1608_v25, 1 }
 0x7ea   :  { %v1610_v28 = vadd.f32 %v1609_v27, %v1608_v25 }
 0x7ec   :  { %v1611_v30 = vmul.f32 0.125, %v1610_v28 }
 0x7ee   :  { %v1612_v32 = vadd.f32 0.00016, %v1611_v30 }
 0x7f0   :  { %3050 = vrsqrt.f32 %v1612_v32 }
 0x7fd   :  { %v3051_v36 = vpop.eup %3050 }
 0x7fe   :  { %v1614_v38 = vmul.f32 %v3051_v36, %v1602_v15 }
 0x800   :  { %v1619_v41 = vmul.f32 %v2710_v37, %v1614_v38 }
 0x802   :  { %v1624_v42 = vadd.f32 %v2711_v40, %v1619_v41 }
 0x804   :  { %v1626_v43 = vmul.f32 1.442695, %v1624_v42  ;;  %vm1625_vm0 = vcmp.gt.f32.partialorder %v1624_v42, 0.0 }
 0x806   :  { %3052 = vpow2.f32 %v1626_v43 }
 0x813   :  { %v3053_v47 = vpop.eup %3052 }
 0x814   :  { %v2712_v48 = vadd.f32 -1.0, %v3053_v47 }
 0x816   :  { %v1629_v49 = vsel %vm1625_vm0, %v1624_v42, %v2712_v48 }
 0x817   :  { %v1644_v50 = vmul.f32 2.0, %v1629_v49 }
 0x819   :  { %v1645_v51 = vsel %vm1643_vm1, %v1644_v50, 0.0 }
 0x81a   :  { %2713 = vmatmul.mubr.msk.f32.vlgmr.msra.gmra.mxu1 %vm1593_vm15, %v1645_v51 }
 0x81b   :  { %2916 = vmatprep.mubr.msk.f32.mxu1 %vm3081_vm2, %v3080_v2 }
 0x8da   :  { %v3527_v52 = vpop.f32.mrf.mxu1 }
 0x8dc   :  { %v1735_v54 = vpop.f32.mrf.mxu1 }
 0x8dd   :  { %2140 = vrot.lane.b32.xlu0 %v1735_v54, %s3084_s3  ;;  %1795 = vrot.lane.b32.xlu1 %v1735_v54, %s3085_s24  ;;  %s3091_s3 = smov 96   ;;  %s3092_s24 = smov 32  }
 0x8e1   :  { %1772 = vperm.xlu0 %3010, %v1735_v54   ;;  %2004 = vrot.lane.b32.xlu1 %v1735_v54, %s3086_s25 }
 0x8e5   :  { %1831 = vperm.xlu1 %3009, %v1735_v54  }
 0x8e9   :  { %3011 = vset.pattern.permute.xlu1 %v3087_v13 }
 0x8ea   :  { %2040 = vperm.xlu1 %3011, %v1735_v54  }
 0x8ee   :  { %3012 = vset.pattern.permute.xlu1 %v3088_v14 }
 0x8ef   :  { %2176 = vperm.xlu1 %3012, %v1735_v54  }
 0x918   :  { %1738 = vxpose.xlu1.b32.start.end [1/1] (short) (narrow) %v1735_v54, 8 }
 0x94f   :  { %v1796_v55 = vpop.permute.xlu1 %1795  ;;  %v2141_v57 = vpop.permute.xlu0 %2140 }
 0x950   :  { %1798 = vxpose.xlu0.b32.start.end [1/1] (short) (narrow) %v1796_v55, 8 }
 0x953   :  { %v2005_v56 = vpop.permute.xlu1 %2004 }
 0x954   :  { %2007 = vxpose.xlu0.b32.start.end [1/1] (short) (narrow) %v2005_v56, 8 }
 0x958   :  { %2143 = vxpose.xlu0.b32.start.end [1/1] (short) (narrow) %v2141_v57, 8 }
 0x95c   :  { %v1773_v13 = vpop.permute.xlu0 %1772 }
 0x960   :  { %v1832_v59 = vpop.permute.xlu1 %1831 }
 0x965   :  { %v2041_v60 = vpop.permute.xlu1 %2040 }
 0x96a   :  { %v2177_v61 = vpop.permute.xlu1 %2176 }
 0x981   :  { %3013 = vset.pattern.permute.xlu0 %v3088_v14 }
 0x994   :  { %v1754_v62 = vpop.trf.xlu1 }
 0x995   :  { %v1778_v63 = vrot.slane %v1754_v62, %v3199_v23 }
 0x997   :  { %v1779_v0 = vadd.f32 %v1778_v63, %v1773_v13 }
 0x999   :  { %v1781_v1 = vmul.f32 0.2, %v1779_v0  ;;  %vm1780_vm3 = vcmp.gt.f32.partialorder %v1779_v0, 0.0 }
 0x99b   :  { %v1782_v19 = vsel %vm1780_vm3, %v1779_v0, %v1781_v1  ;;  %v2335_v0 = vld [vmem:[%s3781_s7 + $0x18] sm:$0xff]  ;;  %v2334_v1 = vld [vmem:[%s3781_s7 + $0x10] sm:$0xff] }
 0x99c   :  { %v1783_v21 = vadd.f32 %v1782_v19, %v3205_v31  ;;  %2909 = vmatpush3.msra.mxu1 %v2335_v0  ;;  %v2333_v19 = vld [vmem:[%s3781_s7 + $0x8] sm:$0xff] }
 0x99d   :  { %2910 = vmatprep.subr.mxu1 %v3080_v2 }
 0x99e   :  { %v1784_v3 = vsel %vm326_vm5, %v1783_v21, -inf  ;;  %2911 = vmatpush3.msra.mxu1 %v2334_v1  ;;  %v2535_v1 = vld [vmem:[%s3782_s6 + $0x70] sm:$0xff] }
 0x99f   :  { %1785 = vmax.xlane.f32.xlu1 %v1784_v3  ;;  %2912 = vmatprep.subr.mxu1 %v3080_v2 }
 0x9a0   :  { %2913 = vmatpush3.msra.mxu1 %v2333_v19 }
 0x9a1   :  { %2914 = vmatprep.subr.mxu1 %v3080_v2 }
 0x9cc   :  { %v1814_v4 = vpop.trf.xlu0 }
 0x9cd   :  { %v1837_v5 = vrot.slane %v1814_v4, %v3199_v23 }
 0x9cf   :  { %v1838_v14 = vadd.f32 %v1837_v5, %v1832_v59 }
 0x9d0   :  { %v2023_v6 = vpop.trf.xlu0 }
 0x9d1   :  { %v1840_v9 = vmul.f32 0.2, %v1838_v14  ;;  %v2046_v10 = vrot.slane %v2023_v6, %v3199_v23  ;;  %vm1839_vm4 = vcmp.gt.f32.partialorder %v1838_v14, 0.0 }
 0x9d3   :  { %v2047_v11 = vadd.f32 %v2046_v10, %v2041_v60  ;;  %v1841_v12 = vsel %vm1839_vm4, %v1838_v14, %v1840_v9 }
 0x9d4   :  { %v2159_v15 = vpop.trf.xlu0  ;;  %v1842_v16 = vadd.f32 %v1841_v12, %v3205_v31 }
 0x9d5   :  { %v2049_v17 = vmul.f32 0.2, %v2047_v11  ;;  %v2182_v18 = vrot.slane %v2159_v15, %v3199_v23  ;;  %vm2048_vm6 = vcmp.gt.f32.partialorder %v2047_v11, 0.0 }
 0x9d6   :  { %v1843_v20 = vsel %vm326_vm5, %v1842_v16, -inf }
 0x9d7   :  { %v2183_v22 = vadd.f32 %v2182_v18, %v2177_v61  ;;  %1844 = vmax.xlane.f32.xlu0 %v1843_v20  ;;  %v2050_v25 = vsel %vm2048_vm6, %v2047_v11, %v2049_v17 }
 0x9d8   :  { %v2051_v26 = vadd.f32 %v2050_v25, %v3205_v31 }
 0x9d9   :  { %v2185_v27 = vmul.f32 0.2, %v2183_v22  ;;  %vm2184_vm7 = vcmp.gt.f32.partialorder %v2183_v22, 0.0 }
 0x9da   :  { %v2052_v28 = vsel %vm326_vm5, %v2051_v26, -inf }
 0x9db   :  { %2053 = vmax.xlane.f32.xlu1 %v2052_v28  ;;  %v2186_v29 = vsel %vm2184_vm7, %v2183_v22, %v2185_v27 }
 0x9dc   :  { %v2187_v30 = vadd.f32 %v2186_v29, %v3205_v31 }
 0x9de   :  { %v2188_v32 = vsel %vm326_vm5, %v2187_v30, -inf }
 0x9df   :  { %2189 = vmax.xlane.f32.xlu0 %v2188_v32 }
 0x9ec   :  { %1855 = vrot.lane.b32.xlu1 %v3527_v52, %s3091_s3 }
 0xa28   :  { %v1786_v23 = vpop.xlane.xlu1 %1785 }
 0xa29   :  { %v1787_v33 = vsub.f32 %v1783_v21, %v1786_v23  ;;  %v2332_v21 = vld [vmem:[%s3781_s7] sm:$0xff] }
 0xa2a   :  { %2915 = vmatpush3.msra.mxu1 %v2332_v21  ;;  %v2534_v21 = vld [vmem:[%s3782_s6 + $0x68] sm:$0xff] }
 0xa2b   :  { %v1788_v34 = vmul.f32 1.442695, %v1787_v33  ;;  %2954 = vmatprep.subr.mxu1 %v3080_v2 }
 0xa2d   :  { %3054 = vpow2.f32 %v1788_v34 }
 0xa3a   :  { %v3055_v24 = vpop.eup %3054 }
 0xa3b   :  { %v1790_v35 = vsel %vm326_vm5, %v3055_v24, 0.0 }
 0xa3c   :  { %1791 = vadd.xlane.f32.xlu0 %v1790_v35 }
 0xa60   :  { %v1845_v36 = vpop.xlane.xlu0 %1844 }
 0xa61   :  { %v1846_v37 = vsub.f32 %v1842_v16, %v1845_v36 }
 0xa63   :  { %v1847_v38 = vmul.f32 1.442695, %v1846_v37 }
 0xa64   :  { %v2054_v39 = vpop.xlane.xlu1 %2053 }
 0xa65   :  { %3056 = vpow2.f32 %v1847_v38  ;;  %v2055_v31 = vsub.f32 %v2051_v26, %v2054_v39  ;;  %v2309_v26 = vstv %s2308_s15 }
 0xa66   :  { %v2310_v29 = vadd.s32 %v2309_v26, %v3403_v53  ;;  %v2522_v26 = vld [vmem:[%s3782_s6 + $0x8] sm:$0xff] }
 0xa67   :  { %v2056_v40 = vmul.f32 1.442695, %v2055_v31 }
 0xa68   :  { %v2190_v41 = vpop.xlane.xlu0 %2189  ;;  %v1856_v42 = vpop.permute.xlu1 %1855  ;;  %v2311_v23 = vadd.s32 %v2310_v29, %v3406_v58  ;;  %v2419_v29 = vld [vmem:[%s3783_s8 + $0x48] sm:$0xff] }
 0xa69   :  { %3058 = vpow2.f32 %v2056_v40  ;;  %v2191_v7 = vsub.f32 %v2187_v30, %v2190_v41  ;;  %2889 = vmatpush3.msra.mxu0 %v1856_v42 }
 0xa6a   :  { %2893 = vmatprep.subr.mxu0 %v3080_v2 }
 0xa6b   :  { %v2192_v43 = vmul.f32 1.442695, %v2191_v7 }
 0xa6d   :  { %3060 = vpow2.f32 %v2192_v43 }
 0xa72   :  { %v3057_v8 = vpop.eup %3056 }
 0xa73   :  { %v1849_v44 = vsel %vm326_vm5, %v3057_v8, 0.0 }
 0xa74   :  { %1850 = vadd.xlane.f32.xlu1 %v1849_v44 }
 0xa76   :  { %v3059_v45 = vpop.eup %3058 }
 0xa77   :  { %v2058_v46 = vsel %vm326_vm5, %v3059_v45, 0.0 }
 0xa78   :  { %2059 = vadd.xlane.f32.xlu1 %v2058_v46  ;;  %v2718_v46 = vld [vmem:[%s3779_s9 + $0x4] ss:$0 sm:$0xff] }
 0xa7a   :  { %v3061_v47 = vpop.eup %3060 }
 0xa7b   :  { %v2194_v48 = vsel %vm326_vm5, %v3061_v47, 0.0 }
 0xa7c   :  { %2195 = vadd.xlane.f32.xlu0 %v2194_v48  ;;  %v2719_v48 = vld [vmem:[%s3779_s9 + $0x5] ss:$0 sm:$0xff] }
 0xa89   :  { %2199 = vrot.lane.b32.xlu1 %v3527_v52, %s3092_s24 }
 0xa92   :  { %2063 = vrot.lane.b32.xlu0 %v3527_v52, %s3090_s29 }
 0xac5   :  { %v1792_v49 = vpop.xlane.xlu0 %1791 }
 0xafd   :  { %v1851_v50 = vpop.xlane.xlu1 %1850 }
 0xafe   :  { %3062 = vrcp.f32 %v1851_v50 }
 0xaff   :  { %3064 = vrcp.f32 %v1792_v49 }
 0xb01   :  { %v2060_v51 = vpop.xlane.xlu1 %2059 }
 0xb02   :  { %3066 = vrcp.f32 %v2060_v51 }
 0xb05   :  { %v2196_v54 = vpop.xlane.xlu0 %2195  ;;  %v2200_v13 = vpop.permute.xlu1 %2199 }
 0xb06   :  { %3068 = vrcp.f32 %v2196_v54 }
 0xb09   :  { %v2064_v61 = vpop.permute.xlu0 %2063 }
 0xb0b   :  { %v3063_v55 = vpop.eup %3062 }
 0xb0c   :  { %v1853_v56 = vmul.f32 %v3063_v55, %v3057_v8  ;;  %v3065_v57 = vpop.eup %3064 }
 0xb0d   :  { %v1794_v59 = vmul.f32 %v3065_v57, %v3055_v24  ;;  %v2312_v24 = vshra.s32 %v2311_v23, 13 }
 0xb0e   :  { %2891 = vmatmul.mubr.msk.f32.vlgmr.msra.gmra.mxu0 %vm326_vm5, %v1853_v56 }
 0xb0f   :  { %2894 = vmatpush3.msra.mxu0 %v3527_v52  ;;  %2895 = vmatprep.mubr.msk.f32.mxu0 %vm3081_vm2, %v3080_v2  ;;  %v3067_v60 = vpop.eup %3066  ;;  %v2313_v37 = vxor.u32 %v2312_v24, %v2311_v23  ;;  %v2416_v23 = vld [vmem:[%s3783_s8 + $0x30] sm:$0xff]  ;;  %v2413_v24 = vld [vmem:[%s3783_s8 + $0x18] sm:$0xff] }
 0xb10   :  { %2898 = vmatprep.subr.mxu0 %v3080_v2  ;;  %v2062_v62 = vmul.f32 %v3067_v60, %v3059_v45 }
 0xb11   :  { %v2314_v31 = vmul.u32 656542357, %v2313_v37  ;;  %v2410_v37 = vld [vmem:[%s3783_s8] sm:$0xff] }
 0xb12   :  { %2896 = vmatmul.mubr.msk.f32.vlgmr.msra.gmra.mxu0 %vm326_vm5, %v1794_v59 }
 0xb13   :  { %2899 = vmatpush3.msra.mxu0 %v2064_v61  ;;  %2900 = vmatprep.mubr.msk.f32.mxu0 %vm3081_vm2, %v3080_v2  ;;  %v3069_v63 = vpop.eup %3068  ;;  %v2315_v42 = vshra.s32 %v2314_v31, 17 }
 0xb14   :  { %2903 = vmatprep.subr.mxu0 %v3080_v2  ;;  %v2198_v52 = vmul.f32 %v3069_v63, %v3061_v47 }
 0xb15   :  { %v2316_v53 = vxor.u32 %v2315_v42, %v2314_v31 }
 0xb16   :  { %2901 = vmatmul.mubr.msk.f32.vlgmr.msra.gmra.mxu0 %vm326_vm5, %v2062_v62 }
 0xb17   :  { %2904 = vmatpush3.msra.mxu0 %v2200_v13  ;;  %2905 = vmatprep.mubr.msk.f32.mxu0 %vm3081_vm2, %v3080_v2  ;;  %v2317_v8 = vmul.u32 16777619, %v2316_v53  ;;  %v2723_v53 = vld [vmem:[%s3779_s9 + $0x8] ss:$0 sm:$0xff] }
 0xb18   :  { %2919 = vmatprep.subr.mxu0 %v3080_v2 }
 0xb19   :  { %v2318_v44 = vshra.s32 %v2317_v8, 5 }
 0xb1a   :  { %2906 = vmatmul.mubr.msk.f32.vlgmr.msra.gmra.mxu0 %vm326_vm5, %v2198_v52  ;;  %v2536_v52 = vld [vmem:[%s3782_s6 + $0x78] sm:$0xff] }
 0xb1b   :  { %2951 = vmatprep.mubr.msk.f32.mxu0 %vm3081_vm2, %v3080_v2  ;;  %v2319_v58 = vxor.u32 %v2318_v44, %v2317_v8  ;;  %v2724_v44 = vld [vmem:[%s3779_s9 + $0x9] ss:$0 sm:$0xff] }
 0xb1d   :  { %v2320_v49 = vand.u32 2147483647, %v2319_v58 }
 0xb1f   :  { %vm2321_vm9 = vcmp.lt.s32.totalorder %v2320_v49, 1073741824 }
 0xbce   :  { %v1927_v3 = vpop.f32.mrf.mxu0 }
 0xbd0   :  { %v2892_v4 = vpop.f32.mrf.mxu0 }
 0xbd1   :  { %v2532_v4 = vld [vmem:[%s3782_s6 + $0x58] sm:$0xff] }
 0xbd2   :  { %v2000_v5 = vpop.f32.mrf.mxu0 }
 0xbd3   :  { %v2001_v9 = vadd.f32 %v2000_v5, %v1927_v3  ;;  %v2533_v3 = vld [vmem:[%s3782_s6 + $0x60] sm:$0xff]  ;;  %v2531_v5 = vld [vmem:[%s3782_s6 + $0x50] sm:$0xff] }
 0xbd4   :  { %v2897_v14 = vpop.f32.mrf.mxu0 }
 0xbd5   :  { %v2530_v14 = vld [vmem:[%s3782_s6 + $0x48] sm:$0xff] }
 0xbd6   :  { %v2135_v6 = vpop.f32.mrf.mxu0 }
 0xbd7   :  { %v2139_v11 = vadd.f32 %v2135_v6, %v2001_v9  ;;  %v2529_v6 = vld [vmem:[%s3782_s6 + $0x40] sm:$0xff]  ;;  %v2528_v9 = vld [vmem:[%s3782_s6 + $0x38] sm:$0xff] }
 0xbd8   :  { %v2902_v10 = vpop.f32.mrf.mxu0 }
 0xbd9   :  { %v2527_v10 = vld [vmem:[%s3782_s6 + $0x30] sm:$0xff] }
 0xbda   :  { %v2271_v12 = vpop.f32.mrf.mxu0 }
 0xbdb   :  { %v2275_v15 = vadd.f32 %v2271_v12, %v2139_v11  ;;  %v2526_v11 = vld [vmem:[%s3782_s6 + $0x28] sm:$0xff]  ;;  %v2425_v12 = vld [vmem:[%s3783_s8 + $0x78] sm:$0xff] }
 0xbdc   :  { %v2907_v16 = vpop.f32.mrf.mxu0  ;;  %2920 = vmatpush3.msra.mxu0 %v2425_v12 }
 0xbdd   :  { %v2277_v17 = vsel %vm2276_vm8, %v2275_v15, 0.0  ;;  %v2525_v16 = vld [vmem:[%s3782_s6 + $0x20] sm:$0xff]  ;;  %2921 = vmatprep.subr.mxu0 %v3080_v2 }
 0xbde   :  { %v2278_v18 = vrot.slane %v2277_v17, 4 }
 0xbe0   :  { %v2279_v20 = vadd.f32 %v2278_v18, %v2277_v17  ;;  %v2423_v17 = vld [vmem:[%s3783_s8 + $0x68] sm:$0xff]  ;;  %v2524_v18 = vld [vmem:[%s3782_s6 + $0x18] sm:$0xff] }
 0xbe2   :  { %v2280_v22 = vrot.slane %v2279_v20, 2 }
 0xbe4   :  { %v2281_v25 = vadd.f32 %v2280_v22, %v2279_v20  ;;  %v2422_v20 = vld [vmem:[%s3783_s8 + $0x60] sm:$0xff]  ;;  %v2523_v22 = vld [vmem:[%s3782_s6 + $0x10] sm:$0xff] }
 0xbe6   :  { %v2282_v27 = vrot.slane %v2281_v25, 1 }
 0xbe8   :  { %v2283_v28 = vadd.f32 %v2282_v27, %v2281_v25  ;;  %v2421_v25 = vld [vmem:[%s3783_s8 + $0x58] sm:$0xff]  ;;  %v2420_v27 = vld [vmem:[%s3783_s8 + $0x50] sm:$0xff] }
 0xbea   :  { %v2284_v30 = vmul.f32 0.125, %v2283_v28  ;;  %v2521_v28 = vld [vmem:[%s3782_s6] sm:$0xff] }
 0xbec   :  { %v2285_v32 = vsub.f32 %v2275_v15, %v2284_v30  ;;  %v2424_v15 = vld [vmem:[%s3783_s8 + $0x70] sm:$0xff]  ;;  %v2418_v30 = vld [vmem:[%s3783_s8 + $0x40] sm:$0xff] }
 0xbed   :  { %2922 = vmatpush3.msra.mxu0 %v2424_v15 }
 0xbee   :  { %v2286_v33 = vmul.f32 %v2285_v32, %v2285_v32  ;;  %2923 = vmatprep.subr.mxu0 %v3080_v2 }
 0xbef   :  { %2924 = vmatpush3.msra.mxu0 %v2423_v17 }
 0xbf0   :  { %v2287_v34 = vsel %vm2276_vm8, %v2286_v33, 0.0  ;;  %2925 = vmatprep.subr.mxu0 %v3080_v2  ;;  %v2415_v33 = vld [vmem:[%s3783_s8 + $0x28] sm:$0xff] }
 0xbf1   :  { %v2288_v35 = vrot.slane %v2287_v34, 4  ;;  %2926 = vmatpush3.msra.mxu0 %v2422_v20 }
 0xbf2   :  { %2927 = vmatprep.subr.mxu0 %v3080_v2 }
 0xbf3   :  { %v2289_v36 = vadd.f32 %v2288_v35, %v2287_v34  ;;  %2928 = vmatpush3.msra.mxu0 %v2421_v25  ;;  %v2414_v34 = vld [vmem:[%s3783_s8 + $0x20] sm:$0xff]  ;;  %v2412_v35 = vld [vmem:[%s3783_s8 + $0x10] sm:$0xff] }
 0xbf4   :  { %2929 = vmatprep.subr.mxu0 %v3080_v2 }
 0xbf5   :  { %v2290_v38 = vrot.slane %v2289_v36, 2  ;;  %2930 = vmatpush3.msra.mxu0 %v2420_v27 }
 0xbf6   :  { %2931 = vmatprep.subr.mxu0 %v3080_v2 }
 0xbf7   :  { %v2291_v39 = vadd.f32 %v2290_v38, %v2289_v36  ;;  %2932 = vmatpush3.msra.mxu0 %v2419_v29  ;;  %v2411_v36 = vld [vmem:[%s3783_s8 + $0x8] sm:$0xff]  ;;  %v2721_v38 = vld [vmem:[%s3779_s9 + $0x6] ss:$0 sm:$0xff] }
 0xbf8   :  { %2933 = vmatprep.subr.mxu0 %v3080_v2 }
 0xbf9   :  { %v2292_v40 = vrot.slane %v2291_v39, 1  ;;  %2934 = vmatpush3.msra.mxu0 %v2418_v30 }
 0xbfa   :  { %2935 = vmatprep.subr.mxu0 %v3080_v2 }
 0xbfb   :  { %v2293_v41 = vadd.f32 %v2292_v40, %v2291_v39  ;;  %v2722_v39 = vld [vmem:[%s3779_s9 + $0x7] ss:$0 sm:$0xff] }
 0xbfd   :  { %v2294_v7 = vmul.f32 0.125, %v2293_v41 }
 0xbff   :  { %v2295_v43 = vadd.f32 0.00016, %v2294_v7 }
 0xc01   :  { %3070 = vrsqrt.f32 %v2295_v43 }
 0xc0e   :  { %v3071_v45 = vpop.eup %3070 }
 0xc0f   :  { %v2297_v47 = vmul.f32 %v3071_v45, %v2285_v32  ;;  %v2417_v32 = vld [vmem:[%s3783_s8 + $0x38] sm:$0xff] }
 0xc10   :  { %2936 = vmatpush3.msra.mxu0 %v2417_v32 }
 0xc11   :  { %v2302_v50 = vmul.f32 %v2718_v46, %v2297_v47  ;;  %2937 = vmatprep.subr.mxu0 %v3080_v2 }
 0xc12   :  { %2938 = vmatpush3.msra.mxu0 %v2416_v23 }
 0xc13   :  { %v2307_v51 = vadd.f32 %v2719_v48, %v2302_v50  ;;  %2939 = vmatprep.subr.mxu0 %v3080_v2  ;;  %v2426_v48 = vld [vmem:[%s3779_s9 + $0xc] sm:$0x1]  ;;  %v2497_v50 = vld [vmem:[%s3779_s9 + $0xd] sm:$0x1] }
 0xc14   :  { %2940 = vmatpush3.msra.mxu0 %v2415_v33 }
 0xc15   :  { %v2322_v54 = vmul.f32 2.0, %v2307_v51  ;;  %2941 = vmatprep.subr.mxu0 %v3080_v2 }
 0xc16   :  { %2942 = vmatpush3.msra.mxu0 %v2414_v34 }
 0xc17   :  { %v2323_v55 = vsel %vm2321_vm9, %v2322_v54, 0.0  ;;  %2943 = vmatprep.subr.mxu0 %v3080_v2 }
 0xc18   :  { %v2324_v56 = vsel %vm2276_vm8, %v2323_v55, 0.0  ;;  %2944 = vmatpush3.msra.mxu0 %v2413_v24 }
 0xc19   :  { %v2325_v57 = vrot.slane %v2324_v56, 4  ;;  %2945 = vmatprep.subr.mxu0 %v3080_v2 }
 0xc1a   :  { %2946 = vmatpush3.msra.mxu0 %v2412_v35 }
 0xc1b   :  { %v2326_v59 = vadd.f32 %v2325_v57, %v2324_v56  ;;  %2947 = vmatprep.subr.mxu0 %v3080_v2  ;;  %v2725_v57 = vld [vmem:[%s3779_s9 + $0xa] ss:$0 sm:$0xff] }
 0xc1c   :  { %2948 = vmatpush3.msra.mxu0 %v2411_v36 }
 0xc1d   :  { %v2327_v60 = vrot.slane %v2326_v59, 2  ;;  %2949 = vmatprep.subr.mxu0 %v3080_v2 }
 0xc1e   :  { %2950 = vmatpush3.msra.mxu0 %v2410_v37 }
 0xc1f   :  { %v2328_v61 = vadd.f32 %v2327_v60, %v2326_v59 }
 0xc21   :  { %v2329_v62 = vrot.slane %v2328_v61, 1 }
 0xc23   :  { %v2330_v63 = vadd.f32 %v2329_v62, %v2328_v61  ;;  %v2503_v62 = vld [vmem:[%s3779_s9 + $0xe] sm:$0x1] }
 0xc25   :  { %v2331_v13 = vmul.f32 0.125, %v2330_v63 }
 0xc27   :  { %2917 = vmatmul.mubr.msk.f32.vlgmr.msra.gmra.mxu1 %vm2276_vm8, %v2331_v13  ;;  %v2505_v0 = vmul.f32 %v2331_v13, %v2323_v55 }
 0xc28   :  { %2955 = vmatpush3.msra.mxu1 %v2536_v52  ;;  %2986 = vmatprep.mubr.msk.f32.mxu1 %vm3081_vm2, %v3080_v2  ;;  %vm2499_vm2 = vcmask 253952  }
 0xc29   :  { %v2506_v19 = vsel %vm2276_vm8, %v2505_v0, 0.0  ;;  %2956 = vmatprep.subr.mxu1 %v3080_v2  ;;  %v2660_v0 = vld [vmem:[%s3779_s9 + $0xf] sm:$0x1] }
 0xc2a   :  { %2507 = vadd.xlane.f32.xlu1 %v2506_v19  ;;  %2957 = vmatpush3.msra.mxu1 %v2535_v1  ;;  %vm2661_vm11 = vcmp.gt.f32.partialorder %v2660_v0, 0.0 }
 0xc2b   :  { %2958 = vmatprep.subr.mxu1 %v3080_v2 }
 0xc2c   :  { %2959 = vmatpush3.msra.mxu1 %v2534_v21 }
 0xc2d   :  { %2960 = vmatprep.subr.mxu1 %v3080_v2 }
 0xc2e   :  { %2961 = vmatpush3.msra.mxu1 %v2533_v3 }
 0xc2f   :  { %2962 = vmatprep.subr.mxu1 %v3080_v2 }
 0xc30   :  { %2963 = vmatpush3.msra.mxu1 %v2532_v4 }
 0xc31   :  { %2964 = vmatprep.subr.mxu1 %v3080_v2 }
 0xc32   :  { %2965 = vmatpush3.msra.mxu1 %v2531_v5 }
 0xc33   :  { %2966 = vmatprep.subr.mxu1 %v3080_v2 }
 0xc34   :  { %2967 = vmatpush3.msra.mxu1 %v2530_v14 }
 0xc35   :  { %2968 = vmatprep.subr.mxu1 %v3080_v2 }
 0xc36   :  { %2969 = vmatpush3.msra.mxu1 %v2529_v6 }
 0xc37   :  { %2970 = vmatprep.subr.mxu1 %v3080_v2 }
 0xc38   :  { %2971 = vmatpush3.msra.mxu1 %v2528_v9 }
 0xc39   :  { %2972 = vmatprep.subr.mxu1 %v3080_v2 }
 0xc3a   :  { %2973 = vmatpush3.msra.mxu1 %v2527_v10 }
 0xc3b   :  { %2974 = vmatprep.subr.mxu1 %v3080_v2 }
 0xc3c   :  { %2975 = vmatpush3.msra.mxu1 %v2526_v11 }
 0xc3d   :  { %2976 = vmatprep.subr.mxu1 %v3080_v2 }
 0xc3e   :  { %2977 = vmatpush3.msra.mxu1 %v2525_v16 }
 0xc3f   :  { %2978 = vmatprep.subr.mxu1 %v3080_v2 }
 0xc40   :  { %2979 = vmatpush3.msra.mxu1 %v2524_v18 }
 0xc41   :  { %2980 = vmatprep.subr.mxu1 %v3080_v2 }
 0xc42   :  { %2981 = vmatpush3.msra.mxu1 %v2523_v22 }
 0xc43   :  { %2982 = vmatprep.subr.mxu1 %v3080_v2 }
 0xc44   :  { %2983 = vmatpush3.msra.mxu1 %v2522_v26 }
 0xc45   :  { %2984 = vmatprep.subr.mxu1 %v3080_v2  ;;  %v2336_v2 = vld [vmem:[%s3779_s9 + $0xb] sm:$0x1] }
 0xc46   :  { %2985 = vmatpush3.msra.mxu1 %v2521_v28 }
 0xcb3   :  { %v2508_v31 = vpop.xlane.xlu1 %2507 }
 0xcb4   :  { %v2514_v40 = vmul.f32 %v2721_v38, %v2508_v31 }
 0xcb6   :  { %v2520_v41 = vadd.f32 %v2722_v39, %v2514_v40 }
 0xcb8   :  { %2987 = vmatmul.mubr.f32.vlgmr.msra.gmra.mxu1 %v2520_v41 }
 0xce7   :  { %v2406_v42 = vpop.f32.mrf.mxu1 }
 0xce8   :  { %v2407_v7 = vadd.f32 %v2406_v42, %v2336_v2 }
 0xce9   :  { %v2918_v43 = vpop.f32.mrf.mxu1 }
 0xcea   :  { %2952 = vmatmul.mubr.f32.vlgmr.msra.gmra.mxu0 %v2407_v7 }
 0xd78   :  { %v2608_v8 = vpop.f32.mrf.mxu1 }
 0xd79   :  { %v2609_v58 = vadd.f32 %v2723_v53, %v2608_v8 }
 0xd7a   :  { %v2988_v45 = vpop.f32.mrf.mxu1 }
 0xd7b   :  { %v2617_v46 = vmul.f32 %v2724_v44, %v2609_v58 }
 0xd7d   :  { %v2618_v47 = vsel %vm1593_vm15, %v2617_v46, 0.0 }
 0xd7e   :  { %2619 = vadd.xlane.f32.xlu0 %v2618_v47 }
 0xdaa   :  { %v2493_v49 = vpop.f32.mrf.mxu0 }
 0xdab   :  { %v2494_v51 = vadd.f32 %v2493_v49, %v2426_v48 }
 0xdac   :  { %v2953_v54 = vpop.f32.mrf.mxu0 }
 0xdad   :  { %v2498_v55 = vmul.f32 %v2497_v50, %v2494_v51 }
 0xdaf   :  { %v2500_v56 = vsel %vm2499_vm2, %v2498_v55, 0.0 }
 0xdb0   :  { %2501 = vadd.xlane.f32.xlu0 %v2500_v56 }
 0xe07   :  { %v2620_v59 = vpop.xlane.xlu0 %2619 }
 0xe08   :  { %v2626_v60 = vadd.f32 %v2725_v57, %v2620_v59 }
 0xe0a   :  { %3072 = vtanh.f32 %v2626_v60 }
 0xe17   :  { %v3073_v61 = vpop.eup %3072 }
 0xe18   :  { %2628 = vxpose.xlu1.b32.start.end [1/1] (short) (narrow) %v3073_v61, 8 }
 0xe39   :  { %v2502_v63 = vpop.xlane.xlu0 %2501 }
 0xe3a   :  { %v2504_v13 = vadd.f32 %v2503_v62, %v2502_v63 }
 0xe3c   :  { %v2683_v52 = vsel %vm2682_vm10, %v2504_v13, 0.0 }
 0xe3d   :  { %2684 = vst [vmem:[%s3784_s10 + $0x2] sm:$0x1] %v2683_v52 }
 0xe94   :  { %v2644_v1 = vpop.trf.xlu1 }
 0xe95   :  { %v2662_v19 = vsel %vm2661_vm11, %v2644_v1, -1e+30 }
 0xe96   :  { %v2664_v21 = vsel %vm2663_vm12, %v2662_v19, -inf }
 0xe97   :  { %2665 = vmax.xlane.f32.xlu0 %v2664_v21 }
 0xf20   :  { %v2666_v3 = vpop.xlane.xlu0 %2665 }
 0xf21   :  { %v2667_v4 = vsub.f32 %v2662_v19, %v2666_v3 }
 0xf23   :  { %v2668_v5 = vmul.f32 1.442695, %v2667_v4 }
 0xf25   :  { %3074 = vpow2.f32 %v2668_v5 }
 0xf32   :  { %v3075_v14 = vpop.eup %3074 }
 0xf33   :  { %v2670_v6 = vsel %vm2663_vm12, %v3075_v14, 0.0 }
 0xf34   :  { %2671 = vadd.xlane.f32.xlu0 %v2670_v6 }
 0xfbd   :  { %v2672_v9 = vpop.xlane.xlu0 %2671 }
 0xfbe   :  { %3076 = vrcp.f32 %v2672_v9 }
 0xfbf   :  { %3078 = vlog2.f32 %v2672_v9 }
 0xfcb   :  { %v3077_v10 = vpop.eup %3076 }
 0xfcc   :  { %v3079_v11 = vpop.eup %3078  ;;  %v2674_v12 = vmul.f32 %v3077_v10, %v3075_v14 }
 0xfcd   :  { %v2676_v15 = vmul.f32 0.6931472, %v3079_v11 }
 0xfce   :  { %v2678_v16 = vsel %vm326_vm5, %v2674_v12, 0.0 }
 0xfcf   :  { %v2677_v17 = vsub.f32 %v2667_v4, %v2676_v15  ;;  %2679 = vst [vmem:[%s3784_s10] sm:$0x1] %v2678_v16 }
 0xfd1   :  { %v2680_v18 = vsel %vm326_vm5, %v2677_v17, 0.0 }
 0xfd2   :  { %2681 = vst [vmem:[%s3784_s10 + $0x1] sm:$0x1] %v2680_v18 }

</bundles_post_ra>
